<compile_context>
chip_gen: v6e
topology: v6e:2x2x1
jax: 0.10.0
libtpu: 0.0.40
codegen_flags: <defaults>
</compile_context>

<pallas_src>
import functools
import math

import jax
import jax.numpy as jnp
from jax.experimental import pallas as pl
from jax.experimental.pallas import tpu as pltpu

LANE = 128


def _round_up(x, m):
    return ((x + m - 1) // m) * m


# ----------------------------------------------------------------------------
# numerics helpers (stable, EUP-friendly)
# ----------------------------------------------------------------------------
def _sigmoid(x):
    # stable sigmoid via tanh (no exp overflow)
    return 0.5 * (jnp.tanh(0.5 * x) + 1.0)


def _silu(x):
    return x * _sigmoid(x)


def _softplus(x):
    # stable softplus: max(x, 0) + log1p(exp(-|x|))
    return jnp.maximum(x, 0.0) + jnp.log1p(jnp.exp(-jnp.abs(x)))


# ----------------------------------------------------------------------------
# MambaBlock kernel: linear_in -> causal depthwise conv -> SiLU -> selective
# scan -> gate -> linear_out -> RMSNorm -> residual
# ----------------------------------------------------------------------------
def mamba_block_kernel(
    x_ref,          # (1, Sc, M) f32   input activations for this (batch, seq-chunk)
    w_in_ref,       # (M, 2H) bf16     linear_in (merged main+residual)
    b_in_ref,       # (1, 2H) f32
    cw_ref,         # (K, H)  f32      depthwise conv weight (tap-major)
    cb_ref,         # (1, H)  f32
    w_xf_ref,       # (H, P)  bf16     fused linear_x: [delta_low | B | C], 128-lane padded segments
    b_xf_ref,       # (1, P)  f32
    w_dt_ref,       # (R, H)  f32      linear_dt (applied with VPU multiply-adds)
    b_dt_ref,       # (1, H)  f32
    At_ref,         # (N, H)  f32      negative A, transposed (H on lanes)
    D_ref,          # (1, H)  f32
    w_out_ref,      # (H, M)  bf16
    b_out_ref,      # (1, M)  f32
    norm_w_ref,     # (1, M)  f32      RMSNorm weight
    o_ref,          # (1, Sc, M) f32   output
    state_scr,      # VMEM (1, N, H)        f32  SSM state, carried across seq chunks
    conv_scr,       # VMEM (1, Sc+K-1, H)   f32  conv buffer, first K-1 rows carried
    xs_scr,         # VMEM (1, Sc, H)       f32
    delta_scr,      # VMEM (1, Sc, H)       f32
    proj_scr,       # VMEM (1, Sc, P)       f32  fused projection slab
    y_scr,          # VMEM (1, Sc, H)       f32
    *,
    time_block,
    off_b,
    off_c,
):
    s_idx = pl.program_id(1)
    Bt, Sc, M = x_ref.shape
    H = D_ref.shape[-1]
    N = At_ref.shape[0]
    R = w_dt_ref.shape[0]
    K = cw_ref.shape[0]
    TB = time_block

    # ---- reset carried state at the start of every batch tile's sequence ----
    @pl.when(s_idx == 0)
    def _():
        state_scr[...] = jnp.zeros_like(state_scr)
        if K > 1:
            conv_scr[:, 0:K - 1, :] = jnp.zeros((Bt, K - 1, H), jnp.float32)

    x_in = x_ref[...]                                            # (1, Sc, M) f32
    x_bf = x_in.reshape(Bt * Sc, M).astype(jnp.bfloat16)

    # ---- linear_in: single (M, 2H) MXU pass, split at H ----
    xr = (jnp.dot(x_bf, w_in_ref[...], preferred_element_type=jnp.float32)
          + b_in_ref[...])                                       # (Sc, 2H)
    xc = xr[:, :H].reshape(Bt, Sc, H)
    res = xr[:, H:].reshape(Bt, Sc, H)

    # ---- causal depthwise conv via persistent (Sc + K - 1, H) buffer ----
    conv_scr[:, pl.ds(K - 1, Sc), :] = xc                        # current chunk after tail
    cw = cw_ref[...]                                             # (K, H)
    conv = cb_ref[...].reshape(1, 1, H)
    for k in range(K):
        conv = conv + cw[k:k + 1, :].reshape(1, 1, H) * conv_scr[:, pl.ds(k, Sc), :]
    if K > 1:
        conv_scr[:, 0:K - 1, :] = xc[:, Sc - (K - 1):, :]        # tail for next chunk
    xs = _silu(conv)                                             # (1, Sc, H)
    xs_scr[...] = xs

    # ---- fused SSM projection: one MXU pass, lane-dense slab store ----
    xs_bf = xs.reshape(Bt * Sc, H).astype(jnp.bfloat16)
    proj = (jnp.dot(xs_bf, w_xf_ref[...], preferred_element_type=jnp.float32)
            + b_xf_ref[...])                                     # (Sc, P)
    proj_scr[...] = proj.reshape(Bt, Sc, -1)

    # ---- delta: low-rank linear_dt as R VPU multiply-adds, then softplus ----
    dt = b_dt_ref[...]                                           # (1, H)
    for r in range(R):
        dt = dt + proj[:, r:r + 1] * w_dt_ref[r:r + 1, :]        # (Sc, H)
    delta_scr[...] = _softplus(dt).reshape(Bt, Sc, H)

    # ---- selective scan: H on lanes, N on sublanes, blocked over time ----
    At = At_ref[...]                                             # (N, H), negative

    def scan_block(j, state):                                    # state: (1, N, H) f32
        t0 = pl.multiple_of(j * TB, TB)
        d_blk = delta_scr[:, pl.ds(t0, TB), :]                   # (1, TB, H)
        u_blk = xs_scr[:, pl.ds(t0, TB), :]                      # (1, TB, H)
        B_blk = proj_scr[:, pl.ds(t0, TB), pl.ds(off_b, N)]      # (1, TB, N)
        C_blk = proj_scr[:, pl.ds(t0, TB), pl.ds(off_c, N)]      # (1, TB, N)

        # Hoisted off the serial chain: one EUP exp slab and one lane->sublane
        # relayout of B per block instead of per step.
        dA_blk = jnp.exp(d_blk[:, :, None, :] * At[None, None, :, :])      # (1, TB, N, H)
        dBu_blk = (d_blk * u_blk)[:, :, None, :] * B_blk[:, :, :, None]    # (1, TB, N, H)

        states = []
        for t in range(TB):                                      # ~2 VALU ops per step on the chain
            state = dA_blk[:, t] * state + dBu_blk[:, t]
            states.append(state)
        st = jnp.stack(states, axis=1)                           # (1, TB, N, H)
        # One blocked C contraction (sublane reduce) + one lane-dense slab store.
        y_scr[:, pl.ds(t0, TB), :] = jnp.sum(st * C_blk[:, :, :, None], axis=2)
        return state

    state = jax.lax.fori_loop(0, Sc // TB, scan_block, state_scr[...])
    state_scr[...] = state                                       # carry to next chunk

    # ---- y + u*D, gate with silu(residual), linear_out ----
    y = y_scr[...] + xs * D_ref[...].reshape(1, 1, H)
    y = y * _silu(res)
    out = (jnp.dot(y.reshape(Bt * Sc, H).astype(jnp.bfloat16), w_out_ref[...],
                   preferred_element_type=jnp.float32)
           + b_out_ref[...]).reshape(Bt, Sc, M)

    # ---- RMSNorm (eps matches reference module) + outer residual ----
    ms = jnp.mean(out * out, axis=-1, keepdims=True)
    normed = out * jax.lax.rsqrt(ms + 1e-15) * norm_w_ref[...].reshape(1, 1, M)
    o_ref[...] = x_in + normed


# ----------------------------------------------------------------------------
# Head kernel: final RMSNorm + vocab projection, tiled over vocab
# ----------------------------------------------------------------------------
def head_kernel(x_ref, norm_w_ref, w_lin_ref, b_lin_ref, o_ref):
    Bt, Sc, M = x_ref.shape
    Vc = o_ref.shape[-1]
    x = x_ref[...]
    ms = jnp.mean(x * x, axis=-1, keepdims=True)
    xn = x * jax.lax.rsqrt(ms + 1e-15) * norm_w_ref[...].reshape(1, 1, M)
    logits = (jnp.dot(xn.reshape(Bt * Sc, M).astype(jnp.bfloat16), w_lin_ref[...],
                      preferred_element_type=jnp.float32) + b_lin_ref[...])
    o_ref[...] = logits.reshape(Bt, Sc, Vc)


# ----------------------------------------------------------------------------
# Wrappers
# ----------------------------------------------------------------------------
def _pick_block(total, target, multiple):
    """Largest divisor of `total` that is <= target and a multiple of `multiple`
    (falls back to `total` — 'full axis' blocks are always legal)."""
    if total <= target:
        return total
    for d in range(target, 0, -1):
        if total % d == 0 and d % multiple == 0:
            return d
    return total


def _block_vmem_bytes(M, H, N, R, K, P, Sc):
    f32, bf16 = 4, 2
    io = 2 * 2 * (Sc * M * f32)                                       # x + out blocks, double-buffered
    w_bf = (M * 2 * H + H * P + H * M) * bf16
    w_f32 = (2 * H + K * H + H + P + R * H + H + N * H + H + M + M) * f32
    weights = 2 * (w_bf + w_f32)                                      # default 2x buffering of specs
    scratch = (N * H + (Sc + K - 1) * H + 3 * Sc * H + Sc * P) * f32
    return io + weights + scratch


def _head_vmem_bytes(M, Sc, Vc):
    f32, bf16 = 4, 2
    return 2 * (Sc * M * f32 + M * Vc * bf16 + Vc * f32 + Sc * Vc * f32) + 2 * M * f32


def _vmem_limit_from(estimate):
    # Generous headroom, floor 32 MiB, capped at the smallest physical budget (v7x: 64 MiB/TC).
    return int(min(max(2 * estimate, 32 << 20), 64 << 20))


def mamba_block(x, p, *, seq_block=128, vmem_limit_bytes=None):
    B, S, M = x.shape
    H = p["D"].shape[-1]
    N = p["At"].shape[0]
    R = p["w_dt"].shape[0]
    K = p["conv_w"].shape[0]
    P = p["w_xf"].shape[-1]
    PR = _round_up(R, LANE)
    PN = _round_up(N, LANE)
    off_b, off_c = PR, PR + PN
    assert P == PR + 2 * PN

    Sc = _pick_block(S, seq_block, 8)
    assert Sc >= K - 1, f"seq chunk {Sc} must be >= kernel_size-1 ({K - 1})"
    TB = math.gcd(Sc, 8)
    grid = (B, S // Sc)

    if vmem_limit_bytes is None:
        vmem_limit_bytes = _vmem_limit_from(_block_vmem_bytes(M, H, N, R, K, P, Sc))

    def resident(shape):
        return pl.BlockSpec(shape, lambda b, s, _n=len(shape): (0,) * _n)

    in_specs = [
        pl.BlockSpec((1, Sc, M), lambda b, s: (b, s, 0)),        # x
        resident((M, 2 * H)), resident((1, 2 * H)),              # w_in, b_in
        resident((K, H)), resident((1, H)),                      # conv_w, conv_b
        resident((H, P)), resident((1, P)),                      # w_xf, b_xf (fused linear_x)
        resident((R, H)), resident((1, H)),                      # w_dt, b_dt
        resident((N, H)), resident((1, H)),                      # At, D
        resident((H, M)), resident((1, M)),                      # w_out, b_out
        resident((1, M)),                                        # norm_w
    ]
    out_spec = pl.BlockSpec((1, Sc, M), lambda b, s: (b, s, 0))

    kernel = functools.partial(mamba_block_kernel, time_block=TB,
                               off_b=off_b, off_c=off_c)

    return pl.pallas_call(
        kernel,
        grid=grid,
        in_specs=in_specs,
        out_specs=out_spec,
        out_shape=jax.ShapeDtypeStruct((B, S, M), jnp.float32),
        scratch_shapes=[
            pltpu.VMEM((1, N, H), jnp.float32),             # SSM state (carried)
            pltpu.VMEM((1, Sc + K - 1, H), jnp.float32),    # conv buffer (tail carried)
            pltpu.VMEM((1, Sc, H), jnp.float32),            # xs
            pltpu.VMEM((1, Sc, H), jnp.float32),            # delta
            pltpu.VMEM((1, Sc, P), jnp.float32),            # fused projection slab
            pltpu.VMEM((1, Sc, H), jnp.float32),            # y
        ],
        input_output_aliases={0: 0},                         # reuse x's HBM buffer
        compiler_params=pltpu.CompilerParams(
            # batch axis "parallel": megacore/v7x needs >=2 batch tiles to use both TCs
            dimension_semantics=("parallel", "arbitrary"),
            vmem_limit_bytes=vmem_limit_bytes,
        ),
    )(
        x,
        p["w_in"], p["b_in"],
        p["conv_w"], p["conv_b"],
        p["w_xf"], p["b_xf"],
        p["w_dt"], p["b_dt"],
        p["At"], p["D"],
        p["w_out"], p["b_out"],
        p["norm_w"],
    )


def mamba_head(x, norm_w, w_lin, b_lin, *, seq_block=256, vocab_block=2048,
               vmem_limit_bytes=None):
    B, S, M = x.shape
    V = w_lin.shape[-1]
    Sc = _pick_block(S, seq_block, 8)
    Vc = _pick_block(V, vocab_block, 128)
    grid = (B, S // Sc, V // Vc)
    if vmem_limit_bytes is None:
        vmem_limit_bytes = _vmem_limit_from(_head_vmem_bytes(M, Sc, Vc))
    return pl.pallas_call(
        head_kernel,
        grid=grid,
        in_specs=[
            pl.BlockSpec((1, Sc, M), lambda b, s, v: (b, s, 0)),
            pl.BlockSpec((1, M), lambda b, s, v: (0, 0)),
            pl.BlockSpec((M, Vc), lambda b, s, v: (0, v)),
            pl.BlockSpec((1, Vc), lambda b, s, v: (0, v)),
        ],
        out_specs=pl.BlockSpec((1, Sc, Vc), lambda b, s, v: (b, s, v)),
        out_shape=jax.ShapeDtypeStruct((B, S, V), jnp.float32),
        compiler_params=pltpu.CompilerParams(
            dimension_semantics=("parallel", "parallel", "parallel"),
            vmem_limit_bytes=vmem_limit_bytes,
        ),
    )(x, norm_w, w_lin, b_lin)


def mamba_forward(input_ids, params):
    # TODO(synk): embedding gather kept in plain JAX (could be a scalar-prefetch DMA kernel).
    x = jnp.take(params["embedding"], input_ids, axis=0).astype(jnp.float32)
    for layer_p in params["layers"]:
        x = mamba_block(x, layer_p)
    return mamba_head(x, params["final_norm_w"], params["w_lin"], params["b_lin"])


# ----------------------------------------------------------------------------
# Deterministic parameter initialization (kernel-ready layout; same math as
# the PyTorch module: Linear/Conv1d uniform(-1/sqrt(fan_in), ...), A = arange).
# ----------------------------------------------------------------------------
def _uniform(key, shape, scale):
    return jax.random.uniform(key, shape, jnp.float32, -scale, scale)


def init_layer_params(key, M, H, R, N, K):
    ks = jax.random.split(key, 10)
    s_in, s_x, s_dt, s_cv = (1.0 / math.sqrt(M), 1.0 / math.sqrt(H),
                             1.0 / math.sqrt(R), 1.0 / math.sqrt(K))
    w_in = _uniform(ks[0], (M, 2 * H), s_in)
    b_in = _uniform(ks[1], (1, 2 * H), s_in)
    w_x = _uniform(ks[2], (H, R + 2 * N), s_x)
    b_x = _uniform(ks[3], (1, R + 2 * N), s_x)
    w_dt = _uniform(ks[4], (R, H), s_dt)
    b_dt = _uniform(ks[5], (1, H), s_dt)
    w_out = _uniform(ks[6], (H, M), s_x)
    b_out = _uniform(ks[7], (1, M), s_x)
    conv_w = _uniform(ks[8], (K, H), s_cv)          # (tap, channel)
    conv_b = _uniform(ks[9], (1, H), s_cv)

    # Fused linear_x with each output segment padded to a 128-lane boundary:
    # [delta_low (R) | pad | B (N) | pad | C (N) | pad].
    PR, PN = _round_up(R, LANE), _round_up(N, LANE)
    P = PR + 2 * PN
    w_xf = jnp.zeros((H, P), jnp.float32)
    w_xf = w_xf.at[:, 0:R].set(w_x[:, 0:R])
    w_xf = w_xf.at[:, PR:PR + N].set(w_x[:, R:R + N])
    w_xf = w_xf.at[:, PR + PN:PR + PN + N].set(w_x[:, R + N:R + 2 * N])
    b_xf = jnp.zeros((1, P), jnp.float32)
    b_xf = b_xf.at[:, 0:R].set(b_x[:, 0:R])
    b_xf = b_xf.at[:, PR:PR + N].set(b_x[:, R:R + N])
    b_xf = b_xf.at[:, PR + PN:PR + PN + N].set(b_x[:, R + N:R + 2 * N])

    # A = -(arange(1, N+1) + 1e-15) broadcast over H; stored transposed (N, H).
    At = -(jnp.arange(1, N + 1, dtype=jnp.float32)[:, None] + 1e-15) \
        * jnp.ones((1, H), jnp.float32)

    bf = jnp.bfloat16
    return dict(
        w_in=w_in.astype(bf), b_in=b_in,
        conv_w=conv_w, conv_b=conv_b,
        w_xf=w_xf.astype(bf), b_xf=b_xf,
        w_dt=w_dt, b_dt=b_dt,                     # applied on the VPU -> keep f32
        At=At, D=jnp.ones((1, H), jnp.float32),
        w_out=w_out.astype(bf), b_out=b_out,
        norm_w=jnp.ones((1, M), jnp.float32),
    )


def init_params(key, model_size, vocab_size, rank, state_size, kernel_size, num_layers):
    hidden = model_size * 2
    keys = jax.random.split(key, num_layers + 3)
    emb = 0.02 * jax.random.normal(keys[0], (vocab_size, model_size), jnp.float32)
    s = 1.0 / math.sqrt(model_size)
    w_lin = _uniform(keys[1], (model_size, vocab_size), s).astype(jnp.bfloat16)
    b_lin = _uniform(keys[2], (1, vocab_size), s)
    layers = [
        init_layer_params(keys[3 + i], model_size, hidden, rank, state_size, kernel_size)
        for i in range(num_layers)
    ]
    return dict(embedding=emb, layers=layers,
                final_norm_w=jnp.ones((1, model_size), jnp.float32),
                w_lin=w_lin, b_lin=b_lin)


# ----------------------------------------------------------------------------
if __name__ == "__main__":
    model_size = 32
    vocab_size = 50
    rank = 4
    state_size = 8
    kernel_size = 4
    num_layers = 2
    batch, seq = 2, 8

    key = jax.random.PRNGKey(0)
    k_params, k_ids = jax.random.split(key)
    params = init_params(k_params, model_size, vocab_size, rank,
                         state_size, kernel_size, num_layers)
    input_ids = jax.random.randint(k_ids, (batch, seq), 0, vocab_size, dtype=jnp.int32)

    logits = mamba_forward(input_ids, params)
    jax.block_until_ready(logits)
    assert logits.shape == (batch, seq, vocab_size)
    assert bool(jnp.all(jnp.isfinite(logits)))
    print("KERNEL_OK")
</pallas_src>

<mosaic_0001>
module attributes {stable_mosaic.version = 11 : i64} {
  func.func @mamba_block_kernel(%arg0: i32, %arg1: i32, %arg2: memref<1x8x32xf32, #tpu.memory_space<vmem>>, %arg3: memref<32x128xbf16, #tpu.memory_space<vmem>>, %arg4: memref<1x128xf32, #tpu.memory_space<vmem>>, %arg5: memref<4x64xf32, #tpu.memory_space<vmem>>, %arg6: memref<1x64xf32, #tpu.memory_space<vmem>>, %arg7: memref<64x384xbf16, #tpu.memory_space<vmem>>, %arg8: memref<1x384xf32, #tpu.memory_space<vmem>>, %arg9: memref<4x64xf32, #tpu.memory_space<vmem>>, %arg10: memref<1x64xf32, #tpu.memory_space<vmem>>, %arg11: memref<8x64xf32, #tpu.memory_space<vmem>>, %arg12: memref<1x64xf32, #tpu.memory_space<vmem>>, %arg13: memref<64x32xbf16, #tpu.memory_space<vmem>>, %arg14: memref<1x32xf32, #tpu.memory_space<vmem>>, %arg15: memref<1x32xf32, #tpu.memory_space<vmem>>, %arg16: memref<1x8x32xf32, #tpu.memory_space<vmem>>, %arg17: memref<1x8x64xf32, #tpu.memory_space<vmem>>, %arg18: memref<1x11x64xf32, #tpu.memory_space<vmem>>, %arg19: memref<1x8x64xf32, #tpu.memory_space<vmem>>, %arg20: memref<1x8x64xf32, #tpu.memory_space<vmem>>, %arg21: memref<1x8x384xf32, #tpu.memory_space<vmem>>, %arg22: memref<1x8x64xf32, #tpu.memory_space<vmem>>) attributes {dimension_semantics = [#tpu.dimension_semantics<parallel>, #tpu.dimension_semantics<arbitrary>], iteration_bounds = array<i64: 2, 1>, scalar_prefetch = 0 : i64, scratch_operands = 6 : i64, tpu.core_type = #tpu.core_type<tc>, window_params = [{transform_indices = @transform_0, window_bounds = array<i64: 1, 8, 32>}, {pipeline_mode = #tpu.pipeline_mode<synchronous>, transform_indices = @transform_1, window_bounds = array<i64: 32, 128>}, {pipeline_mode = #tpu.pipeline_mode<synchronous>, transform_indices = @transform_2, window_bounds = array<i64: 1, 128>}, {pipeline_mode = #tpu.pipeline_mode<synchronous>, transform_indices = @transform_3, window_bounds = array<i64: 4, 64>}, {pipeline_mode = #tpu.pipeline_mode<synchronous>, transform_indices = @transform_4, window_bounds = array<i64: 1, 64>}, {pipeline_mode = #tpu.pipeline_mode<synchronous>, transform_indices = @transform_5, window_bounds = array<i64: 64, 384>}, {pipeline_mode = #tpu.pipeline_mode<synchronous>, transform_indices = @transform_6, window_bounds = array<i64: 1, 384>}, {pipeline_mode = #tpu.pipeline_mode<synchronous>, transform_indices = @transform_7, window_bounds = array<i64: 4, 64>}, {pipeline_mode = #tpu.pipeline_mode<synchronous>, transform_indices = @transform_8, window_bounds = array<i64: 1, 64>}, {pipeline_mode = #tpu.pipeline_mode<synchronous>, transform_indices = @transform_9, window_bounds = array<i64: 8, 64>}, {pipeline_mode = #tpu.pipeline_mode<synchronous>, transform_indices = @transform_10, window_bounds = array<i64: 1, 64>}, {pipeline_mode = #tpu.pipeline_mode<synchronous>, transform_indices = @transform_11, window_bounds = array<i64: 64, 32>}, {pipeline_mode = #tpu.pipeline_mode<synchronous>, transform_indices = @transform_12, window_bounds = array<i64: 1, 32>}, {pipeline_mode = #tpu.pipeline_mode<synchronous>, transform_indices = @transform_13, window_bounds = array<i64: 1, 32>}, {transform_indices = @transform_14, window_bounds = array<i64: 1, 8, 32>}]} {
    %c0_i32 = arith.constant 0 : i32
    %0 = arith.cmpi eq, %arg1, %c0_i32 : i32
    %1 = arith.extui %0 : i1 to i32
    %c0_i32_0 = arith.constant 0 : i32
    %2 = arith.cmpi ne, %1, %c0_i32_0 : i32
    scf.if %2 {
      %cst_94 = arith.constant 0.000000e+00 : f32
      %227 = vector.broadcast %cst_94 : f32 to vector<1x8x64xf32>
      %c0_95 = arith.constant 0 : index
      %c0_96 = arith.constant 0 : index
      %c0_97 = arith.constant 0 : index
      %228 = vector.load %arg17[%c0_95, %c0_96, %c0_97] : memref<1x8x64xf32, #tpu.memory_space<vmem>>, vector<1x8x64xf32>
      tpu.vector_store %arg17[%c0_95, %c0_96, %c0_97], %227 {strides = array<i32>} : memref<1x8x64xf32, #tpu.memory_space<vmem>>, vector<1x8x64xf32>,
      %cst_98 = arith.constant 0.000000e+00 : f32
      %229 = vector.broadcast %cst_98 : f32 to vector<1x3x64xf32>
      %c0_99 = arith.constant 0 : index
      %c0_100 = arith.constant 0 : index
      %c0_101 = arith.constant 0 : index
      %230 = vector.load %arg18[%c0_99, %c0_100, %c0_101] : memref<1x11x64xf32, #tpu.memory_space<vmem>>, vector<1x3x64xf32>
      tpu.vector_store %arg18[%c0_99, %c0_100, %c0_101], %229 {strides = array<i32>} : memref<1x11x64xf32, #tpu.memory_space<vmem>>, vector<1x3x64xf32>,
    } else {
    }
    %c0 = arith.constant 0 : index
    %c0_1 = arith.constant 0 : index
    %c0_2 = arith.constant 0 : index
    %3 = vector.load %arg2[%c0, %c0_1, %c0_2] : memref<1x8x32xf32, #tpu.memory_space<vmem>>, vector<1x8x32xf32>
    %4 = vector.shape_cast %3 : vector<1x8x32xf32> to vector<8x32xf32>
    %5 = arith.truncf %4 : vector<8x32xf32> to vector<8x32xbf16>
    %c0_3 = arith.constant 0 : index
    %c0_4 = arith.constant 0 : index
    %6 = vector.load %arg3[%c0_3, %c0_4] : memref<32x128xbf16, #tpu.memory_space<vmem>>, vector<32x128xbf16>
    %cst = arith.constant dense<0.000000e+00> : vector<8x128xf32>
    %7 = tpu.matmul %5, %6, %cst {dimension_numbers = #tpu.dot_dimension_numbers<[1], [0], [0], [1], [0, 0, 1, 1], [], []>} : vector<8x32xbf16>, vector<32x128xbf16>, vector<8x128xf32> -> vector<8x128xf32>
    %c0_5 = arith.constant 0 : index
    %c0_6 = arith.constant 0 : index
    %8 = vector.load %arg4[%c0_5, %c0_6] : memref<1x128xf32, #tpu.memory_space<vmem>>, vector<1x128xf32>
    %9 = vector.broadcast %8 : vector<1x128xf32> to vector<8x128xf32>
    %10 = arith.addf %7, %9 : vector<8x128xf32>
    %11 = vector.extract_strided_slice %10 {offsets = [0, 0], sizes = [8, 64], strides = [1, 1]} : vector<8x128xf32> to vector<8x64xf32>
    %12 = vector.shape_cast %11 : vector<8x64xf32> to vector<1x8x64xf32>
    %13 = vector.extract_strided_slice %10 {offsets = [0, 64], sizes = [8, 64], strides = [1, 1]} : vector<8x128xf32> to vector<8x64xf32>
    %14 = vector.shape_cast %13 : vector<8x64xf32> to vector<1x8x64xf32>
    %c0_7 = arith.constant 0 : index
    %c3 = arith.constant 3 : index
    %c0_8 = arith.constant 0 : index
    %15 = vector.load %arg18[%c0_7, %c3, %c0_8] : memref<1x11x64xf32, #tpu.memory_space<vmem>>, vector<1x8x64xf32>
    tpu.vector_store %arg18[%c0_7, %c3, %c0_8], %12 {strides = array<i32>} : memref<1x11x64xf32, #tpu.memory_space<vmem>>, vector<1x8x64xf32>,
    %c0_9 = arith.constant 0 : index
    %c0_10 = arith.constant 0 : index
    %16 = vector.load %arg5[%c0_9, %c0_10] : memref<4x64xf32, #tpu.memory_space<vmem>>, vector<4x64xf32>
    %c0_11 = arith.constant 0 : index
    %c0_12 = arith.constant 0 : index
    %17 = vector.load %arg6[%c0_11, %c0_12] : memref<1x64xf32, #tpu.memory_space<vmem>>, vector<1x64xf32>
    %18 = vector.shape_cast %17 : vector<1x64xf32> to vector<1x1x64xf32>
    %19 = vector.extract_strided_slice %16 {offsets = [0, 0], sizes = [1, 64], strides = [1, 1]} : vector<4x64xf32> to vector<1x64xf32>
    %20 = vector.shape_cast %19 : vector<1x64xf32> to vector<1x1x64xf32>
    %c0_13 = arith.constant 0 : index
    %c0_14 = arith.constant 0 : index
    %c0_15 = arith.constant 0 : index
    %21 = vector.load %arg18[%c0_13, %c0_14, %c0_15] : memref<1x11x64xf32, #tpu.memory_space<vmem>>, vector<1x8x64xf32>
    %22 = vector.broadcast %20 : vector<1x1x64xf32> to vector<1x8x64xf32>
    %23 = arith.mulf %22, %21 : vector<1x8x64xf32>
    %24 = vector.broadcast %18 : vector<1x1x64xf32> to vector<1x8x64xf32>
    %25 = arith.addf %24, %23 : vector<1x8x64xf32>
    %26 = vector.extract_strided_slice %16 {offsets = [1, 0], sizes = [1, 64], strides = [1, 1]} : vector<4x64xf32> to vector<1x64xf32>
    %27 = vector.shape_cast %26 : vector<1x64xf32> to vector<1x1x64xf32>
    %c0_16 = arith.constant 0 : index
    %c1 = arith.constant 1 : index
    %c0_17 = arith.constant 0 : index
    %28 = vector.load %arg18[%c0_16, %c1, %c0_17] : memref<1x11x64xf32, #tpu.memory_space<vmem>>, vector<1x8x64xf32>
    %29 = vector.broadcast %27 : vector<1x1x64xf32> to vector<1x8x64xf32>
    %30 = arith.mulf %29, %28 : vector<1x8x64xf32>
    %31 = arith.addf %25, %30 : vector<1x8x64xf32>
    %32 = vector.extract_strided_slice %16 {offsets = [2, 0], sizes = [1, 64], strides = [1, 1]} : vector<4x64xf32> to vector<1x64xf32>
    %33 = vector.shape_cast %32 : vector<1x64xf32> to vector<1x1x64xf32>
    %c0_18 = arith.constant 0 : index
    %c2 = arith.constant 2 : index
    %c0_19 = arith.constant 0 : index
    %34 = vector.load %arg18[%c0_18, %c2, %c0_19] : memref<1x11x64xf32, #tpu.memory_space<vmem>>, vector<1x8x64xf32>
    %35 = vector.broadcast %33 : vector<1x1x64xf32> to vector<1x8x64xf32>
    %36 = arith.mulf %35, %34 : vector<1x8x64xf32>
    %37 = arith.addf %31, %36 : vector<1x8x64xf32>
    %38 = vector.extract_strided_slice %16 {offsets = [3, 0], sizes = [1, 64], strides = [1, 1]} : vector<4x64xf32> to vector<1x64xf32>
    %39 = vector.shape_cast %38 : vector<1x64xf32> to vector<1x1x64xf32>
    %c0_20 = arith.constant 0 : index
    %c3_21 = arith.constant 3 : index
    %c0_22 = arith.constant 0 : index
    %40 = vector.load %arg18[%c0_20, %c3_21, %c0_22] : memref<1x11x64xf32, #tpu.memory_space<vmem>>, vector<1x8x64xf32>
    %41 = vector.broadcast %39 : vector<1x1x64xf32> to vector<1x8x64xf32>
    %42 = arith.mulf %41, %40 : vector<1x8x64xf32>
    %43 = arith.addf %37, %42 : vector<1x8x64xf32>
    %44 = vector.extract_strided_slice %12 {offsets = [0, 5, 0], sizes = [1, 3, 64], strides = [1, 1, 1]} : vector<1x8x64xf32> to vector<1x3x64xf32>
    %c0_23 = arith.constant 0 : index
    %c0_24 = arith.constant 0 : index
    %c0_25 = arith.constant 0 : index
    %45 = vector.load %arg18[%c0_23, %c0_24, %c0_25] : memref<1x11x64xf32, #tpu.memory_space<vmem>>, vector<1x3x64xf32>
    tpu.vector_store %arg18[%c0_23, %c0_24, %c0_25], %44 {strides = array<i32>} : memref<1x11x64xf32, #tpu.memory_space<vmem>>, vector<1x3x64xf32>,
    %cst_26 = arith.constant 5.000000e-01 : f32
    %46 = vector.broadcast %cst_26 : f32 to vector<1x8x64xf32>
    %47 = arith.mulf %46, %43 : vector<1x8x64xf32>
    %48 = math.tanh %47 : vector<1x8x64xf32>
    %cst_27 = arith.constant 1.000000e+00 : f32
    %49 = vector.broadcast %cst_27 : f32 to vector<1x8x64xf32>
    %50 = arith.addf %48, %49 : vector<1x8x64xf32>
    %cst_28 = arith.constant 5.000000e-01 : f32
    %51 = vector.broadcast %cst_28 : f32 to vector<1x8x64xf32>
    %52 = arith.mulf %51, %50 : vector<1x8x64xf32>
    %53 = arith.mulf %43, %52 : vector<1x8x64xf32>
    %c0_29 = arith.constant 0 : index
    %c0_30 = arith.constant 0 : index
    %c0_31 = arith.constant 0 : index
    %54 = vector.load %arg19[%c0_29, %c0_30, %c0_31] : memref<1x8x64xf32, #tpu.memory_space<vmem>>, vector<1x8x64xf32>
    tpu.vector_store %arg19[%c0_29, %c0_30, %c0_31], %53 {strides = array<i32>} : memref<1x8x64xf32, #tpu.memory_space<vmem>>, vector<1x8x64xf32>,
    %55 = vector.shape_cast %53 : vector<1x8x64xf32> to vector<8x64xf32>
    %56 = arith.truncf %55 : vector<8x64xf32> to vector<8x64xbf16>
    %c0_32 = arith.constant 0 : index
    %c0_33 = arith.constant 0 : index
    %57 = vector.load %arg7[%c0_32, %c0_33] : memref<64x384xbf16, #tpu.memory_space<vmem>>, vector<64x384xbf16>
    %cst_34 = arith.constant dense<0.000000e+00> : vector<8x384xf32>
    %58 = tpu.matmul %56, %57, %cst_34 {dimension_numbers = #tpu.dot_dimension_numbers<[1], [0], [0], [1], [0, 0, 1, 1], [], []>} : vector<8x64xbf16>, vector<64x384xbf16>, vector<8x384xf32> -> vector<8x384xf32>
    %c0_35 = arith.constant 0 : index
    %c0_36 = arith.constant 0 : index
    %59 = vector.load %arg8[%c0_35, %c0_36] : memref<1x384xf32, #tpu.memory_space<vmem>>, vector<1x384xf32>
    %60 = vector.broadcast %59 : vector<1x384xf32> to vector<8x384xf32>
    %61 = arith.addf %58, %60 : vector<8x384xf32>
    %62 = vector.shape_cast %61 : vector<8x384xf32> to vector<1x8x384xf32>
    %c0_37 = arith.constant 0 : index
    %c0_38 = arith.constant 0 : index
    %c0_39 = arith.constant 0 : index
    %63 = vector.load %arg21[%c0_37, %c0_38, %c0_39] : memref<1x8x384xf32, #tpu.memory_space<vmem>>, vector<1x8x384xf32>
    tpu.vector_store %arg21[%c0_37, %c0_38, %c0_39], %62 {strides = array<i32>} : memref<1x8x384xf32, #tpu.memory_space<vmem>>, vector<1x8x384xf32>,
    %c0_40 = arith.constant 0 : index
    %c0_41 = arith.constant 0 : index
    %64 = vector.load %arg10[%c0_40, %c0_41] : memref<1x64xf32, #tpu.memory_space<vmem>>, vector<1x64xf32>
    %65 = vector.extract_strided_slice %61 {offsets = [0, 0], sizes = [8, 1], strides = [1, 1]} : vector<8x384xf32> to vector<8x1xf32>
    %c0_42 = arith.constant 0 : index
    %c0_43 = arith.constant 0 : index
    %66 = vector.load %arg9[%c0_42, %c0_43] : memref<4x64xf32, #tpu.memory_space<vmem>>, vector<1x64xf32>
    %67 = vector.broadcast %65 : vector<8x1xf32> to vector<8x64xf32>
    %68 = vector.broadcast %66 : vector<1x64xf32> to vector<8x64xf32>
    %69 = arith.mulf %67, %68 : vector<8x64xf32>
    %70 = vector.broadcast %64 : vector<1x64xf32> to vector<8x64xf32>
    %71 = arith.addf %70, %69 : vector<8x64xf32>
    %72 = vector.extract_strided_slice %61 {offsets = [0, 1], sizes = [8, 1], strides = [1, 1]} : vector<8x384xf32> to vector<8x1xf32>
    %c1_44 = arith.constant 1 : index
    %c0_45 = arith.constant 0 : index
    %73 = vector.load %arg9[%c1_44, %c0_45] : memref<4x64xf32, #tpu.memory_space<vmem>>, vector<1x64xf32>
    %74 = vector.broadcast %72 : vector<8x1xf32> to vector<8x64xf32>
    %75 = vector.broadcast %73 : vector<1x64xf32> to vector<8x64xf32>
    %76 = arith.mulf %74, %75 : vector<8x64xf32>
    %77 = arith.addf %71, %76 : vector<8x64xf32>
    %78 = vector.extract_strided_slice %61 {offsets = [0, 2], sizes = [8, 1], strides = [1, 1]} : vector<8x384xf32> to vector<8x1xf32>
    %c2_46 = arith.constant 2 : index
    %c0_47 = arith.constant 0 : index
    %79 = vector.load %arg9[%c2_46, %c0_47] : memref<4x64xf32, #tpu.memory_space<vmem>>, vector<1x64xf32>
    %80 = vector.broadcast %78 : vector<8x1xf32> to vector<8x64xf32>
    %81 = vector.broadcast %79 : vector<1x64xf32> to vector<8x64xf32>
    %82 = arith.mulf %80, %81 : vector<8x64xf32>
    %83 = arith.addf %77, %82 : vector<8x64xf32>
    %84 = vector.extract_strided_slice %61 {offsets = [0, 3], sizes = [8, 1], strides = [1, 1]} : vector<8x384xf32> to vector<8x1xf32>
    %c3_48 = arith.constant 3 : index
    %c0_49 = arith.constant 0 : index
    %85 = vector.load %arg9[%c3_48, %c0_49] : memref<4x64xf32, #tpu.memory_space<vmem>>, vector<1x64xf32>
    %86 = vector.broadcast %84 : vector<8x1xf32> to vector<8x64xf32>
    %87 = vector.broadcast %85 : vector<1x64xf32> to vector<8x64xf32>
    %88 = arith.mulf %86, %87 : vector<8x64xf32>
    %89 = arith.addf %83, %88 : vector<8x64xf32>
    %cst_50 = arith.constant 0.000000e+00 : f32
    %90 = vector.broadcast %cst_50 : f32 to vector<8x64xf32>
    %91 = arith.maximumf %89, %90 : vector<8x64xf32>
    %92 = math.absf %89 : vector<8x64xf32>
    %cst_51 = arith.constant 0.000000e+00 : f32
    %93 = vector.broadcast %cst_51 : f32 to vector<8x64xf32>
    %94 = arith.subf %93, %92 : vector<8x64xf32>
    %95 = math.exp %94 : vector<8x64xf32>
    %96 = math.log1p %95 : vector<8x64xf32>
    %97 = arith.addf %91, %96 : vector<8x64xf32>
    %98 = vector.shape_cast %97 : vector<8x64xf32> to vector<1x8x64xf32>
    %c0_52 = arith.constant 0 : index
    %c0_53 = arith.constant 0 : index
    %c0_54 = arith.constant 0 : index
    %99 = vector.load %arg20[%c0_52, %c0_53, %c0_54] : memref<1x8x64xf32, #tpu.memory_space<vmem>>, vector<1x8x64xf32>
    tpu.vector_store %arg20[%c0_52, %c0_53, %c0_54], %98 {strides = array<i32>} : memref<1x8x64xf32, #tpu.memory_space<vmem>>, vector<1x8x64xf32>,
    %c0_55 = arith.constant 0 : index
    %c0_56 = arith.constant 0 : index
    %100 = vector.load %arg11[%c0_55, %c0_56] : memref<8x64xf32, #tpu.memory_space<vmem>>, vector<8x64xf32>
    %c0_57 = arith.constant 0 : index
    %c0_58 = arith.constant 0 : index
    %c0_59 = arith.constant 0 : index
    %101 = vector.load %arg17[%c0_57, %c0_58, %c0_59] : memref<1x8x64xf32, #tpu.memory_space<vmem>>, vector<1x8x64xf32>
    %c0_i32_60 = arith.constant 0 : i32
    %c8_i32 = arith.constant 8 : i32
    %102 = arith.muli %c0_i32_60, %c8_i32 : i32
    %103 = tpu.assume_multiple %102, 8 : i32
    %c0_61 = arith.constant 0 : index
    %104 = arith.index_cast %103 : i32 to index
    %c0_62 = arith.constant 0 : index
    %105 = vector.load %arg20[%c0_61, %104, %c0_62] : memref<1x8x64xf32, #tpu.memory_space<vmem>>, vector<1x8x64xf32>
    %c0_63 = arith.constant 0 : index
    %106 = arith.index_cast %103 : i32 to index
    %c0_64 = arith.constant 0 : index
    %107 = vector.load %arg19[%c0_63, %106, %c0_64] : memref<1x8x64xf32, #tpu.memory_space<vmem>>, vector<1x8x64xf32>
    %c0_65 = arith.constant 0 : index
    %108 = arith.index_cast %103 : i32 to index
    %c128 = arith.constant 128 : index
    %109 = vector.load %arg21[%c0_65, %108, %c128] : memref<1x8x384xf32, #tpu.memory_space<vmem>>, vector<1x8x8xf32>
    %c0_66 = arith.constant 0 : index
    %110 = arith.index_cast %103 : i32 to index
    %c256 = arith.constant 256 : index
    %111 = vector.load %arg21[%c0_66, %110, %c256] : memref<1x8x384xf32, #tpu.memory_space<vmem>>, vector<1x8x8xf32>
    %112 = vector.shape_cast %105 : vector<1x8x64xf32> to vector<1x8x1x64xf32>
    %113 = vector.shape_cast %100 : vector<8x64xf32> to vector<1x1x8x64xf32>
    %114 = vector.broadcast %112 : vector<1x8x1x64xf32> to vector<1x8x8x64xf32>
    %115 = vector.broadcast %113 : vector<1x1x8x64xf32> to vector<1x8x8x64xf32>
    %116 = arith.mulf %114, %115 : vector<1x8x8x64xf32>
    %117 = math.exp %116 : vector<1x8x8x64xf32>
    %118 = arith.mulf %105, %107 : vector<1x8x64xf32>
    %119 = vector.shape_cast %118 : vector<1x8x64xf32> to vector<1x8x1x64xf32>
    %120 = vector.shape_cast %109 : vector<1x8x8xf32> to vector<1x8x8x1xf32>
    %121 = vector.broadcast %119 : vector<1x8x1x64xf32> to vector<1x8x8x64xf32>
    %122 = vector.broadcast %120 : vector<1x8x8x1xf32> to vector<1x8x8x64xf32>
    %123 = arith.mulf %121, %122 : vector<1x8x8x64xf32>
    %124 = vector.extract_strided_slice %117 {offsets = [0, 0, 0, 0], sizes = [1, 1, 8, 64], strides = [1, 1, 1, 1]} : vector<1x8x8x64xf32> to vector<1x1x8x64xf32>
    %125 = vector.shape_cast %124 : vector<1x1x8x64xf32> to vector<1x8x64xf32>
    %126 = arith.mulf %125, %101 : vector<1x8x64xf32>
    %127 = vector.extract_strided_slice %123 {offsets = [0, 0, 0, 0], sizes = [1, 1, 8, 64], strides = [1, 1, 1, 1]} : vector<1x8x8x64xf32> to vector<1x1x8x64xf32>
    %128 = vector.shape_cast %127 : vector<1x1x8x64xf32> to vector<1x8x64xf32>
    %129 = arith.addf %126, %128 : vector<1x8x64xf32>
    %130 = vector.extract_strided_slice %117 {offsets = [0, 1, 0, 0], sizes = [1, 1, 8, 64], strides = [1, 1, 1, 1]} : vector<1x8x8x64xf32> to vector<1x1x8x64xf32>
    %131 = vector.shape_cast %130 : vector<1x1x8x64xf32> to vector<1x8x64xf32>
    %132 = arith.mulf %131, %129 : vector<1x8x64xf32>
    %133 = vector.extract_strided_slice %123 {offsets = [0, 1, 0, 0], sizes = [1, 1, 8, 64], strides = [1, 1, 1, 1]} : vector<1x8x8x64xf32> to vector<1x1x8x64xf32>
    %134 = vector.shape_cast %133 : vector<1x1x8x64xf32> to vector<1x8x64xf32>
    %135 = arith.addf %132, %134 : vector<1x8x64xf32>
    %136 = vector.extract_strided_slice %117 {offsets = [0, 2, 0, 0], sizes = [1, 1, 8, 64], strides = [1, 1, 1, 1]} : vector<1x8x8x64xf32> to vector<1x1x8x64xf32>
    %137 = vector.shape_cast %136 : vector<1x1x8x64xf32> to vector<1x8x64xf32>
    %138 = arith.mulf %137, %135 : vector<1x8x64xf32>
    %139 = vector.extract_strided_slice %123 {offsets = [0, 2, 0, 0], sizes = [1, 1, 8, 64], strides = [1, 1, 1, 1]} : vector<1x8x8x64xf32> to vector<1x1x8x64xf32>
    %140 = vector.shape_cast %139 : vector<1x1x8x64xf32> to vector<1x8x64xf32>
    %141 = arith.addf %138, %140 : vector<1x8x64xf32>
    %142 = vector.extract_strided_slice %117 {offsets = [0, 3, 0, 0], sizes = [1, 1, 8, 64], strides = [1, 1, 1, 1]} : vector<1x8x8x64xf32> to vector<1x1x8x64xf32>
    %143 = vector.shape_cast %142 : vector<1x1x8x64xf32> to vector<1x8x64xf32>
    %144 = arith.mulf %143, %141 : vector<1x8x64xf32>
    %145 = vector.extract_strided_slice %123 {offsets = [0, 3, 0, 0], sizes = [1, 1, 8, 64], strides = [1, 1, 1, 1]} : vector<1x8x8x64xf32> to vector<1x1x8x64xf32>
    %146 = vector.shape_cast %145 : vector<1x1x8x64xf32> to vector<1x8x64xf32>
    %147 = arith.addf %144, %146 : vector<1x8x64xf32>
    %148 = vector.extract_strided_slice %117 {offsets = [0, 4, 0, 0], sizes = [1, 1, 8, 64], strides = [1, 1, 1, 1]} : vector<1x8x8x64xf32> to vector<1x1x8x64xf32>
    %149 = vector.shape_cast %148 : vector<1x1x8x64xf32> to vector<1x8x64xf32>
    %150 = arith.mulf %149, %147 : vector<1x8x64xf32>
    %151 = vector.extract_strided_slice %123 {offsets = [0, 4, 0, 0], sizes = [1, 1, 8, 64], strides = [1, 1, 1, 1]} : vector<1x8x8x64xf32> to vector<1x1x8x64xf32>
    %152 = vector.shape_cast %151 : vector<1x1x8x64xf32> to vector<1x8x64xf32>
    %153 = arith.addf %150, %152 : vector<1x8x64xf32>
    %154 = vector.extract_strided_slice %117 {offsets = [0, 5, 0, 0], sizes = [1, 1, 8, 64], strides = [1, 1, 1, 1]} : vector<1x8x8x64xf32> to vector<1x1x8x64xf32>
    %155 = vector.shape_cast %154 : vector<1x1x8x64xf32> to vector<1x8x64xf32>
    %156 = arith.mulf %155, %153 : vector<1x8x64xf32>
    %157 = vector.extract_strided_slice %123 {offsets = [0, 5, 0, 0], sizes = [1, 1, 8, 64], strides = [1, 1, 1, 1]} : vector<1x8x8x64xf32> to vector<1x1x8x64xf32>
    %158 = vector.shape_cast %157 : vector<1x1x8x64xf32> to vector<1x8x64xf32>
    %159 = arith.addf %156, %158 : vector<1x8x64xf32>
    %160 = vector.extract_strided_slice %117 {offsets = [0, 6, 0, 0], sizes = [1, 1, 8, 64], strides = [1, 1, 1, 1]} : vector<1x8x8x64xf32> to vector<1x1x8x64xf32>
    %161 = vector.shape_cast %160 : vector<1x1x8x64xf32> to vector<1x8x64xf32>
    %162 = arith.mulf %161, %159 : vector<1x8x64xf32>
    %163 = vector.extract_strided_slice %123 {offsets = [0, 6, 0, 0], sizes = [1, 1, 8, 64], strides = [1, 1, 1, 1]} : vector<1x8x8x64xf32> to vector<1x1x8x64xf32>
    %164 = vector.shape_cast %163 : vector<1x1x8x64xf32> to vector<1x8x64xf32>
    %165 = arith.addf %162, %164 : vector<1x8x64xf32>
    %166 = vector.extract_strided_slice %117 {offsets = [0, 7, 0, 0], sizes = [1, 1, 8, 64], strides = [1, 1, 1, 1]} : vector<1x8x8x64xf32> to vector<1x1x8x64xf32>
    %167 = vector.shape_cast %166 : vector<1x1x8x64xf32> to vector<1x8x64xf32>
    %168 = arith.mulf %167, %165 : vector<1x8x64xf32>
    %169 = vector.extract_strided_slice %123 {offsets = [0, 7, 0, 0], sizes = [1, 1, 8, 64], strides = [1, 1, 1, 1]} : vector<1x8x8x64xf32> to vector<1x1x8x64xf32>
    %170 = vector.shape_cast %169 : vector<1x1x8x64xf32> to vector<1x8x64xf32>
    %171 = arith.addf %168, %170 : vector<1x8x64xf32>
    %172 = vector.shape_cast %129 : vector<1x8x64xf32> to vector<1x1x8x64xf32>
    %173 = vector.shape_cast %135 : vector<1x8x64xf32> to vector<1x1x8x64xf32>
    %174 = vector.shape_cast %141 : vector<1x8x64xf32> to vector<1x1x8x64xf32>
    %175 = vector.shape_cast %147 : vector<1x8x64xf32> to vector<1x1x8x64xf32>
    %176 = vector.shape_cast %153 : vector<1x8x64xf32> to vector<1x1x8x64xf32>
    %177 = vector.shape_cast %159 : vector<1x8x64xf32> to vector<1x1x8x64xf32>
    %178 = vector.shape_cast %165 : vector<1x8x64xf32> to vector<1x1x8x64xf32>
    %179 = vector.shape_cast %171 : vector<1x8x64xf32> to vector<1x1x8x64xf32>
    %180 = tpu.concatenate %172, %173, %174, %175, %176, %177, %178, %179 in 1 : vector<1x1x8x64xf32>, vector<1x1x8x64xf32>, vector<1x1x8x64xf32>, vector<1x1x8x64xf32>, vector<1x1x8x64xf32>, vector<1x1x8x64xf32>, vector<1x1x8x64xf32>, vector<1x1x8x64xf32> -> vector<1x8x8x64xf32>
    %181 = vector.shape_cast %111 : vector<1x8x8xf32> to vector<1x8x8x1xf32>
    %182 = vector.broadcast %181 : vector<1x8x8x1xf32> to vector<1x8x8x64xf32>
    %183 = arith.mulf %180, %182 : vector<1x8x8x64xf32>
    %cst_67 = arith.constant dense<0.000000e+00> : vector<1x8x64xf32>
    %184 = vector.multi_reduction <add>, %183, %cst_67 [2] : vector<1x8x8x64xf32> to vector<1x8x64xf32>
    %c0_68 = arith.constant 0 : index
    %185 = arith.index_cast %103 : i32 to index
    %c0_69 = arith.constant 0 : index
    %186 = vector.load %arg22[%c0_68, %185, %c0_69] : memref<1x8x64xf32, #tpu.memory_space<vmem>>, vector<1x8x64xf32>
    tpu.vector_store %arg22[%c0_68, %185, %c0_69], %184 {strides = array<i32>} : memref<1x8x64xf32, #tpu.memory_space<vmem>>, vector<1x8x64xf32>,
    %c1_i32 = arith.constant 1 : i32
    %c0_70 = arith.constant 0 : index
    %c0_71 = arith.constant 0 : index
    %c0_72 = arith.constant 0 : index
    %187 = vector.load %arg17[%c0_70, %c0_71, %c0_72] : memref<1x8x64xf32, #tpu.memory_space<vmem>>, vector<1x8x64xf32>
    tpu.vector_store %arg17[%c0_70, %c0_71, %c0_72], %171 {strides = array<i32>} : memref<1x8x64xf32, #tpu.memory_space<vmem>>, vector<1x8x64xf32>,
    %c0_73 = arith.constant 0 : index
    %c0_74 = arith.constant 0 : index
    %c0_75 = arith.constant 0 : index
    %188 = vector.load %arg22[%c0_73, %c0_74, %c0_75] : memref<1x8x64xf32, #tpu.memory_space<vmem>>, vector<1x8x64xf32>
    %c0_76 = arith.constant 0 : index
    %c0_77 = arith.constant 0 : index
    %189 = vector.load %arg12[%c0_76, %c0_77] : memref<1x64xf32, #tpu.memory_space<vmem>>, vector<1x64xf32>
    %190 = vector.shape_cast %189 : vector<1x64xf32> to vector<1x1x64xf32>
    %191 = vector.broadcast %190 : vector<1x1x64xf32> to vector<1x8x64xf32>
    %192 = arith.mulf %53, %191 : vector<1x8x64xf32>
    %193 = arith.addf %188, %192 : vector<1x8x64xf32>
    %cst_78 = arith.constant 5.000000e-01 : f32
    %194 = vector.broadcast %cst_78 : f32 to vector<1x8x64xf32>
    %195 = arith.mulf %194, %14 : vector<1x8x64xf32>
    %196 = math.tanh %195 : vector<1x8x64xf32>
    %cst_79 = arith.constant 1.000000e+00 : f32
    %197 = vector.broadcast %cst_79 : f32 to vector<1x8x64xf32>
    %198 = arith.addf %196, %197 : vector<1x8x64xf32>
    %cst_80 = arith.constant 5.000000e-01 : f32
    %199 = vector.broadcast %cst_80 : f32 to vector<1x8x64xf32>
    %200 = arith.mulf %199, %198 : vector<1x8x64xf32>
    %201 = arith.mulf %14, %200 : vector<1x8x64xf32>
    %202 = arith.mulf %193, %201 : vector<1x8x64xf32>
    %203 = vector.shape_cast %202 : vector<1x8x64xf32> to vector<8x64xf32>
    %204 = arith.truncf %203 : vector<8x64xf32> to vector<8x64xbf16>
    %c0_81 = arith.constant 0 : index
    %c0_82 = arith.constant 0 : index
    %205 = vector.load %arg13[%c0_81, %c0_82] : memref<64x32xbf16, #tpu.memory_space<vmem>>, vector<64x32xbf16>
    %cst_83 = arith.constant dense<0.000000e+00> : vector<8x32xf32>
    %206 = tpu.matmul %204, %205, %cst_83 {dimension_numbers = #tpu.dot_dimension_numbers<[1], [0], [0], [1], [0, 0, 1, 1], [], []>} : vector<8x64xbf16>, vector<64x32xbf16>, vector<8x32xf32> -> vector<8x32xf32>
    %c0_84 = arith.constant 0 : index
    %c0_85 = arith.constant 0 : index
    %207 = vector.load %arg14[%c0_84, %c0_85] : memref<1x32xf32, #tpu.memory_space<vmem>>, vector<1x32xf32>
    %208 = vector.broadcast %207 : vector<1x32xf32> to vector<8x32xf32>
    %209 = arith.addf %206, %208 : vector<8x32xf32>
    %210 = vector.shape_cast %209 : vector<8x32xf32> to vector<1x8x32xf32>
    %211 = arith.mulf %210, %210 : vector<1x8x32xf32>
    %cst_86 = arith.constant dense<0.000000e+00> : vector<1x8xf32>
    %212 = vector.multi_reduction <add>, %211, %cst_86 [2] : vector<1x8x32xf32> to vector<1x8xf32>
    %213 = vector.shape_cast %212 : vector<1x8xf32> to vector<1x8x1xf32>
    %cst_87 = arith.constant 3.200000e+01 : f32
    %214 = vector.broadcast %cst_87 : f32 to vector<1x8x1xf32>
    %215 = arith.divf %213, %214 : vector<1x8x1xf32>
    %cst_88 = arith.constant 1.000000e-15 : f32
    %216 = vector.broadcast %cst_88 : f32 to vector<1x8x1xf32>
    %217 = arith.addf %215, %216 : vector<1x8x1xf32>
    %218 = math.rsqrt %217 : vector<1x8x1xf32>
    %219 = vector.broadcast %218 : vector<1x8x1xf32> to vector<1x8x32xf32>
    %220 = arith.mulf %210, %219 : vector<1x8x32xf32>
    %c0_89 = arith.constant 0 : index
    %c0_90 = arith.constant 0 : index
    %221 = vector.load %arg15[%c0_89, %c0_90] : memref<1x32xf32, #tpu.memory_space<vmem>>, vector<1x32xf32>
    %222 = vector.shape_cast %221 : vector<1x32xf32> to vector<1x1x32xf32>
    %223 = vector.broadcast %222 : vector<1x1x32xf32> to vector<1x8x32xf32>
    %224 = arith.mulf %220, %223 : vector<1x8x32xf32>
    %225 = arith.addf %3, %224 : vector<1x8x32xf32>
    %c0_91 = arith.constant 0 : index
    %c0_92 = arith.constant 0 : index
    %c0_93 = arith.constant 0 : index
    %226 = vector.load %arg16[%c0_91, %c0_92, %c0_93] : memref<1x8x32xf32, #tpu.memory_space<vmem>>, vector<1x8x32xf32>
    tpu.vector_store %arg16[%c0_91, %c0_92, %c0_93], %225 {strides = array<i32>} : memref<1x8x32xf32, #tpu.memory_space<vmem>>, vector<1x8x32xf32>,
    return
  }
  func.func @transform_0(%arg0: i32, %arg1: i32) -> (i32, i32, i32) {
    %c0_i32 = arith.constant 0 : i32
    %c0_i32_0 = arith.constant 0 : i32
    return %arg0, %arg1, %c0_i32 : i32, i32, i32
  }
  func.func @transform_1(%arg0: i32, %arg1: i32) -> (i32, i32) {
    %c0_i32 = arith.constant 0 : i32
    %c0_i32_0 = arith.constant 0 : i32
    %c0_i32_1 = arith.constant 0 : i32
    return %c0_i32, %c0_i32_0 : i32, i32
  }
  func.func @transform_2(%arg0: i32, %arg1: i32) -> (i32, i32) {
    %c0_i32 = arith.constant 0 : i32
    %c0_i32_0 = arith.constant 0 : i32
    %c0_i32_1 = arith.constant 0 : i32
    return %c0_i32, %c0_i32_0 : i32, i32
  }
  func.func @transform_3(%arg0: i32, %arg1: i32) -> (i32, i32) {
    %c0_i32 = arith.constant 0 : i32
    %c0_i32_0 = arith.constant 0 : i32
    %c0_i32_1 = arith.constant 0 : i32
    return %c0_i32, %c0_i32_0 : i32, i32
  }
  func.func @transform_4(%arg0: i32, %arg1: i32) -> (i32, i32) {
    %c0_i32 = arith.constant 0 : i32
    %c0_i32_0 = arith.constant 0 : i32
    %c0_i32_1 = arith.constant 0 : i32
    return %c0_i32, %c0_i32_0 : i32, i32
  }
  func.func @transform_5(%arg0: i32, %arg1: i32) -> (i32, i32) {
    %c0_i32 = arith.constant 0 : i32
    %c0_i32_0 = arith.constant 0 : i32
    %c0_i32_1 = arith.constant 0 : i32
    return %c0_i32, %c0_i32_0 : i32, i32
  }
  func.func @transform_6(%arg0: i32, %arg1: i32) -> (i32, i32) {
    %c0_i32 = arith.constant 0 : i32
    %c0_i32_0 = arith.constant 0 : i32
    %c0_i32_1 = arith.constant 0 : i32
    return %c0_i32, %c0_i32_0 : i32, i32
  }
  func.func @transform_7(%arg0: i32, %arg1: i32) -> (i32, i32) {
    %c0_i32 = arith.constant 0 : i32
    %c0_i32_0 = arith.constant 0 : i32
    %c0_i32_1 = arith.constant 0 : i32
    return %c0_i32, %c0_i32_0 : i32, i32
  }
  func.func @transform_8(%arg0: i32, %arg1: i32) -> (i32, i32) {
    %c0_i32 = arith.constant 0 : i32
    %c0_i32_0 = arith.constant 0 : i32
    %c0_i32_1 = arith.constant 0 : i32
    return %c0_i32, %c0_i32_0 : i32, i32
  }
  func.func @transform_9(%arg0: i32, %arg1: i32) -> (i32, i32) {
    %c0_i32 = arith.constant 0 : i32
    %c0_i32_0 = arith.constant 0 : i32
    %c0_i32_1 = arith.constant 0 : i32
    return %c0_i32, %c0_i32_0 : i32, i32
  }
  func.func @transform_10(%arg0: i32, %arg1: i32) -> (i32, i32) {
    %c0_i32 = arith.constant 0 : i32
    %c0_i32_0 = arith.constant 0 : i32
    %c0_i32_1 = arith.constant 0 : i32
    return %c0_i32, %c0_i32_0 : i32, i32
  }
  func.func @transform_11(%arg0: i32, %arg1: i32) -> (i32, i32) {
    %c0_i32 = arith.constant 0 : i32
    %c0_i32_0 = arith.constant 0 : i32
    %c0_i32_1 = arith.constant 0 : i32
    return %c0_i32, %c0_i32_0 : i32, i32
  }
  func.func @transform_12(%arg0: i32, %arg1: i32) -> (i32, i32) {
    %c0_i32 = arith.constant 0 : i32
    %c0_i32_0 = arith.constant 0 : i32
    %c0_i32_1 = arith.constant 0 : i32
    return %c0_i32, %c0_i32_0 : i32, i32
  }
  func.func @transform_13(%arg0: i32, %arg1: i32) -> (i32, i32) {
    %c0_i32 = arith.constant 0 : i32
    %c0_i32_0 = arith.constant 0 : i32
    %c0_i32_1 = arith.constant 0 : i32
    return %c0_i32, %c0_i32_0 : i32, i32
  }
  func.func @transform_14(%arg0: i32, %arg1: i32) -> (i32, i32, i32) {
    %c0_i32 = arith.constant 0 : i32
    %c0_i32_0 = arith.constant 0 : i32
    return %arg0, %arg1, %c0_i32 : i32, i32, i32
  }
}

</mosaic_0001>

<bundles_post_ra>
// kernel: tpu_custom_call.1
= control target key start
LH: loop header
LB: loop body
LE: loop exit
PB: predicated region body
PF: predicated region fallthrough
CT: control target
= control target key end

     0   :  { %s2372_s0 = inlined_call_operand.hbm [shape: f32[2,8,32], index: 0, kind: input, shape index: {}, may-alias: {0,14}]   ;;  %s2373_s1 = inlined_call_operand.vmem [shape: bf16[32,128], index: 1, kind: input, shape index: {}]   ;;  %s2374_s2 = inlined_call_operand.vmem [shape: f32[1,128], index: 2, kind: input, shape index: {}]   ;;  %s2375_s3 = inlined_call_operand.vmem [shape: f32[4,64], index: 3, kind: input, shape index: {}]   ;;  %s2376_s4 = inlined_call_operand.vmem [shape: f32[1,64], index: 4, kind: input, shape index: {}]   ;;  %s2377_s5 = inlined_call_operand.hbm [shape: bf16[64,384], index: 5, kind: input, shape index: {}]   ;;  %s2378_s6 = inlined_call_operand.vmem [shape: f32[1,384], index: 6, kind: input, shape index: {}]   ;;  %s2379_s7 = inlined_call_operand.vmem [shape: f32[4,64], index: 7, kind: input, shape index: {}]   ;;  %s2380_s8 = inlined_call_operand.vmem [shape: f32[1,64], index: 8, kind: input, shape index: {}]   ;;  %s2381_s9 = inlined_call_operand.vmem [shape: f32[8,64], index: 9, kind: input, shape index: {}]   ;;  %s2382_s10 = inlined_call_operand.vmem [shape: f32[1,64], index: 10, kind: input, shape index: {}]   ;;  %s2383_s11 = inlined_call_operand.vmem [shape: bf16[64,32], index: 11, kind: input, shape index: {}]   ;;  %s2384_s12 = inlined_call_operand.vmem [shape: f32[1,32], index: 12, kind: input, shape index: {}]   ;;  %s2385_s13 = inlined_call_operand.vmem [shape: f32[1,32], index: 13, kind: input, shape index: {}]   ;;  %s2386_s14 = inlined_call_operand.hbm [shape: f32[2,8,32], index: 14, kind: output, shape index: {}, may-alias: {0,14}]  }
   0x1   :  { %2393 = sst [smem:[#allocation22_spill]] %s2377_s5 }
   0x2   :  { %2394 = sst [smem:[#allocation23_spill]] %s2381_s9 }
   0x3   :  { %2395 = sst [smem:[#allocation24_spill]] %s2382_s10 }
   0x4   :  { %2396 = sst [smem:[#allocation25_spill]] %s2384_s12 }
   0x5   :  { %2397 = sst [smem:[#allocation26_spill]] %s2385_s13 }
   0x6   :  { %2398 = sst [smem:[#allocation27_spill]] %s2386_s14 }
   0x7   :  { %19 = vsyncpa [#allocation9], 0 }
   0x8   :  { %21 = vsyncpa [#allocation9 + $0x1], 0 }
   0x9   :  { %22 = vsyncpa [#allocation12], 0 }
   0xa   :  { %23 = vsyncpa [#allocation10], 0 }
   0xb   :  { %25 = vsyncpa [#allocation10 + $0x1], 0  ;;  %s2015_s29 = smov 0   ;;  %s2017_s30 = smov 0  }
   0xc   :  { %s2019_s15 = smov 0   ;;  %s2021_s16 = smov 0  }
   0xd   :  { %s2023_s17 = smov 0   ;;  %s2025_s18 = smov 0  }
   0xe LB: > { %2399 = sst [smem:[#allocation17_spill]] %s1905_s29  ;;  %s1558_s19 = sadd.s32 4294967295, %s1925_s18   ;;  %s1925_s18 = sphi %s2025_s18, %s31_s18   ;;  %s1921_s17 = sphi %s2023_s17, %s2426_s17   ;;  %s1917_s16 = sphi %s2021_s16, %s2425_s16   ;;  %s1913_s15 = sphi %s2019_s15, %s2429_s15   ;;  %s1909_s30 = sphi %s2017_s30, %s2428_s30   ;;  %s1905_s29 = sphi %s2015_s29, %s2427_s29  }
   0xf   : > { %2400 = sst [smem:[#allocation18_spill]] %s1917_s16  ;;  %s1559_s20 = sadd.s32 4294967294, %s1925_s18  }
  0x10   : > { %2401 = sst [smem:[#allocation19_spill]] %s1921_s17  ;;  %p65_p0 = scmp.ne.s32.totalorder %s1909_s30, %s1905_s29 }
  0x11   : > { %p2049_p1 = scmp.eq.s32.totalorder %s1558_s19, 0  ;;  %p2053_p2 = scmp.eq.s32.totalorder %s1558_s19, 1 }
  0x12   : > { %p370_p3 = scmp.eq.s32.totalorder %s1559_s20, 1  ;;  %p1560_p5 = scmp.ge.s32.totalorder %s1925_s18, 1 }
  0x13   : > { %p2059_p4 = por %p2049_p1, %p65_p0  ;;  %p377_p7 = scmp.lt.s32.totalorder %s1925_s18, 3 }
  0x14   : > { %p2064_p6 = por %p370_p3, %p65_p0  ;;  %s1927_s26 = smov [#allocation11]  }
  0x15   : > { %s2404_s23 = scalar_select %p2059_p4, 1, 0 }
  0x16   : > { %s2405_s24 = scalar_select %p2064_p6, 1, 0 }
  0x17   : > { %p2069_p8 = pnand %p1560_p5, %p377_p7  ;;  %s401_s27 = sshll.u32 %s1927_s26, 4  ;;  %s402_s27 = int_to_ptr.vmem [resolvable:$true] %s401_s27 }
  0x18   : > { %2406 = sst [smem:[#allocation20_spill]] %s2405_s24  ;;  %s43_s19 = sadd.s32 1, %s1921_s17 }
  0x19   : > { %p1658_p9 = pneg %p2069_p8  ;;  %s1798_s20 = scalar_lea.vmem %s402_s27, 1536 }
  0x1a   : > { %p1799_p13 = scmp.ne.s32.totalorder %s402_s27, %s1798_s20  ;;  %p1806_p5 = scmp.lt.s32.totalorder %s402_s27, %s402_s27 }
  0x1b   : > { %p2078_p11 = pnand %p1658_p9, %p2049_p1  ;;  %p1807_p7 = scmp.lt.s32.totalorder %s1798_s20, %s1798_s20 }
  0x1d   : > { %p1789_p12 = pneg %p2078_p11  ;;  %p1808_p6 = por %p1807_p7, %p1806_p5 }
  0x1f   : > { %p1801_p0 = pnand %p1799_p13, %p1789_p12 }
  0x21   : > { %p1802_p3 = pneg %p1801_p0 }
  0x23   : > { %p1809_p4 = pnand %p1808_p6, %p1802_p3 }
  0x25   : > { %1812 = shalt.err (!%p1809_p4)
}
  0x26   : > { %s1928_s26 = smov 192   ;;  %s1929_s24 = smov 12  }
  0x27   : > { %s2409_s5 = sld [smem:[#allocation22_spill]]  ;;  %p45_p6 = scmp.ge.s32.totalorder %s43_s19, 2 }
  0x28   : > { %s52_s20 = sadd.s32 1, %s1913_s15  ;;  %p59_p4 = scmp.ne.s32.totalorder %s1913_s15, %s1909_s30 }
  0x29   : > { %p60_p9 = scmp.eq.s32.totalorder %s1925_s18, 0  ;;  %s2431_s19 = smov (%p45_p6, %s43_s19), 0 }
  0x2a   : > { %2410 = sst [smem:[#allocation21_spill]] %s2431_s19  ;;  %p2102_p13 = por %p2053_p2, %p59_p4 }
  0x2b   : > { %p2096_p12 = por %p60_p9, %p59_p4  ;;  %s47_s28 = ssub.s32 %s1921_s17, %s2431_s19 }
  0x2c   : > { %p1671_p0 = scmp.lt.s32.totalorder %s1925_s18, 2  ;;  %s439_s14 = sand.u32 1, %s1913_s15  }
  0x2d   : > { %1661 = dma.hbm_to_vmem [thread:$0]  (!%p2078_p11), %s2409_s5, 1536, %s402_s27, [#allocation12], %s1928_s26, %s1928_s26, %s1929_s24  }
  0x2e   : > { %p50_p11 = scmp.eq.s32.totalorder %s47_s28, 0  ;;  %s1563_s29 = sshll.u32 %s439_s14, 3 }
  0x2f   : > { %s1564_s27 = sshll.u32 %s1921_s17, 7  ;;  %s443_s10 = scalar_lea.vmem [#allocation8], %s1563_s29 }
  0x30   : > { %s2111_s24 = scalar_select %p50_p11, %s1913_s15, %s52_s20  }
  0x31   : > { %s449_s12 = scalar_lea.hbm %s2372_s0, %s1564_s27  ;;  %s451_s9 = sshll.u32 %s443_s10, 4  ;;  %s452_s9 = int_to_ptr.vmem [resolvable:$true] %s451_s9 }
  0x32   : > { %p2119_p2 = pnand %p1671_p0, %p2096_p12  ;;  %s440_s19 = scalar_lea.sflag [#allocation9], %s439_s14 }
  0x33   : > { %s1826_s28 = scalar_lea.vmem %s452_s9, 128  ;;  %s1930_s20 = smov [#allocation8]  }
  0x34   : > { %p1815_p3 = pneg %p2119_p2  ;;  %p1827_p5 = scmp.ne.s32.totalorder %s452_s9, %s1826_s28 }
  0x35   : > { %s1831_s17 = sshll.u32 %s1930_s20, 4  ;;  %s1832_s17 = int_to_ptr.vmem [resolvable:$false] %s1831_s17 }
  0x36   : > { %p1829_p7 = pnand %p1827_p5, %p1815_p3  ;;  %s1833_s5 = scalar_lea.vmem %s1832_s17, 256 }
  0x37   : > { %p1834_p4 = scmp.lt.s32.totalorder %s452_s9, %s1832_s17  ;;  %p1835_p9 = scmp.lt.s32.totalorder %s1833_s5, %s1826_s28 }
  0x38   : > { %p1830_p6 = pneg %p1829_p7 }
  0x39   : > { %p1836_p11 = por %p1835_p9, %p1834_p4 }
  0x3b   : > { %p1837_p10 = pnand %p1836_p11, %p1830_p6 }
  0x3d   : > { %1840 = shalt.err (!%p1837_p10)
}
  0x3e   : > { %1665 = dma.hbm_to_vmem [thread:$0]  (!%p2119_p2), %s449_s12, 128, %s452_s9, %s440_s19  }
  0x3f   : > { %460 = sbr.rel (%p2069_p8) target bundleno = 1157 (0x485), region = 76  ;;  %s2130_s10 = sand.u32 (!%p2069_p8), 1, %s1909_s30  }
  0x40   : > { %s1566_s13 = sshll.u32 (!%p2069_p8), %s2130_s10, 3  ;;  %s463_s14 = scalar_lea.sflag (!%p2069_p8), [#allocation9], %s2130_s10 }
  0x41   : > { %s466_s17 = scalar_lea.vmem (!%p2069_p8), [#allocation8], %s1566_s13  ;;  %p2414_p12 = scmp.ne.s32.totalorder (!%p2069_p8), %s2404_s23, 0 }
  0x44   : > { %1892 = dma.done.wait (%p2414_p12), %s463_s14, 128  }
  0x45   : > { %1894 = vsyncadd (%p2414_p12), %s463_s14, 4294967168 }
  0x46   : > { %1896 = dma.done.wait (%p2049_p1), [#allocation12], 1536  }
  0x47   : > { %1898 = vsyncadd (%p2049_p1), [#allocation12], 4294965760  ;;  %vm520_vm0 = vcmask 523264   ;;  %v1931_v0 = vmov 0.0   ;;  %vm1932_vm1 = vmmov 0   ;;  %v1738_v1 = vld [vmem:[%s2373_s1 + $0x8] sm:$0xff]   ;;  %v598_v18 = vlaneseq }
  0x48   : > { %1618 = vmatprep.subr.bf16.mxu0 %v1931_v0  ;;  %1622 = vmatprep.mubr.msk.bf16.mxu0 %vm1932_vm1, %v1931_v0  ;;  %521 = vst.msk [vmem:[#allocation2] sm:$0xff] %vm520_vm0, %v1931_v0  ;;  %v1739_v2 = vld [vmem:[%s2373_s1] sm:$0xff]   ;;  %v2155_v3 = vld [vmem:[%s466_s17] sm:$0xff]  ;;  %vm549_vm2 = vcmask 261120   ;;  %vm522_vm3 = vcmask 518144   ;;  %v1933_v12 = vmov 0  }
  0x49   : > { %1619 = vmatpush3.bf16.msra.mxu0 %v1738_v1  ;;  %v525_v4 = vpack.c.bf16 %v2155_v3, %v2155_v3  ;;  %523 = vst.msk [vmem:[#allocation3] sm:$0x7] %vm522_vm3, %v1931_v0  ;;  %v1740_v5 = vld [vmem:[#allocation11 + $0x4c] ss:$12 sps:$4 sm:$0xff]   ;;  %v1742_v6 = vld [vmem:[#allocation11 + $0x48] ss:$12 sps:$4 sm:$0xff]   ;;  %772 = vmatprep.mubr.bf16.mxu1 %v1933_v12 }
  0x4a   : > { %1620 = vmatprep.subr.bf16.mxu0 %v1931_v0  ;;  %v1743_v7 = vld [vmem:[#allocation11 + $0x50] ss:$12 sps:$4 sm:$0xff]   ;;  %v1744_v8 = vld [vmem:[#allocation11 + $0x34] ss:$12 sps:$4 sm:$0xff]   ;;  %748 = vmatprep.subr.bf16.mxu1 %v1740_v5  ;;  %v1747_v9 = vld [vmem:[#allocation11 + $0x38] ss:$12 sps:$4 sm:$0xff]  }
  0x4b   : > { %749 = vmatpush1.bf16.msra.mxu1 %v1742_v6  ;;  %v1746_v10 = vld [vmem:[#allocation11 + $0x30] ss:$12 sps:$4 sm:$0xff]   ;;  %1733 = vset.pattern.permute.xlu0 %v1933_v12  ;;  %v1751_v13 = vld [vmem:[#allocation11 + $0x20] ss:$12 sps:$4 sm:$0xff]   ;;  %v1750_v14 = vld [vmem:[#allocation11 + $0x18] ss:$12 sps:$4 sm:$0xff]  }
  0x4c   : > { %750 = vmatprep.subr.bf16.mxu1 %v1744_v8  ;;  %v1748_v11 = vld [vmem:[#allocation11 + $0x1c] ss:$12 sps:$4 sm:$0xff]   ;;  %v1752_v15 = vld [vmem:[#allocation11 + $0x4] ss:$12 sps:$4 sm:$0xff]   ;;  %v1754_v17 = vld [vmem:[#allocation11] ss:$12 sps:$4 sm:$0xff]  }
  0x4d   : > { %1621 = vmatpush3.bf16.msra.mxu0 %v1739_v2  ;;  %v1755_v16 = vld [vmem:[#allocation11 + $0x8] ss:$12 sps:$4 sm:$0xff]   ;;  %v1569_v19 = vld [vmem:[%s2374_s2] ss:$0 sm:$0xff]  ;;  %v2172_v20 = vshrl.u32 %v598_v18, 7  ;;  %vm631_vm4 = vcmask 523269  }
  0x4e   : > { %1626 = vmatprep.subr.bf16.mxu0 %v1931_v0  ;;  %v595_v26 = vld [vmem:[%s2375_s3] sm:$0xf]  ;;  %v1934_v54 = vmov 2   ;;  %v1936_v8 = vmov 1   ;;  %s1937_s5 = smov 64   ;;  %s2415_s25 = sld [smem:[#allocation23_spill]] }
  0x4f   : > { %751 = vmatpush1.bf16.msra.mxu1 %v1746_v10  ;;  %v2179_v24 = vsub.s32 0, %v2172_v20  ;;  %v2185_v27 = vsub.s32 1, %v2172_v20  ;;  %v2189_v30 = vsub.s32 2, %v2172_v20  ;;  %v1573_v31 = vld [vmem:[%s2376_s4] ss:$0 sm:$0xff]  ;;  %v2196_v33 = vsub.s32 3, %v2172_v20  ;;  %1735 = vset.pattern.permute.xlu1 %v1934_v54 }
  0x50   : > { %1623 = vmatmul.mubr.msk.bf16.vlgmr.msra.gmra.mxu0 %vm549_vm2, %v525_v4  ;;  %752 = vmatprep.subr.bf16.mxu1 %v1748_v11  ;;  %v656_v55 = vld [vmem:[%s2378_s6] sm:$0x7]  ;;  %vm1314_vm6 = vcmask 1041409   ;;  %vm1316_vm7 = vcmask 1042434   ;;  %vm1318_vm8 = vcmask 1043459   ;;  %vm1320_vm9 = vcmask 1044484  }
  0x51   : > { %1634 = vmatprep.mubr.msk.bf16.mxu0 %vm1932_vm1, %v1931_v0  ;;  %1627 = vmatpush3.bf16.msra.mxu0 %v1743_v7  ;;  %v601_v29 = vrot.slane %v595_v26, %v2179_v24  ;;  %v614_v32 = vrot.slane %v595_v26, %v2185_v27  ;;  %v621_v38 = vrot.slane %v595_v26, %v2189_v30  ;;  %v1935_v7 = vmov 3   ;;  %s2416_s29 = sld [smem:[#allocation24_spill]]  ;;  %s514_s9 = scalar_lea.vmem [#allocation13], %s1566_s13 }
  0x52   : > { %1628 = vmatprep.subr.bf16.mxu0 %v1931_v0  ;;  %v628_v41 = vrot.slane %v595_v26, %v2196_v33  ;;  %v661_v56 = vrot.slane %v656_v55, %v2179_v24  ;;  %v665_v60 = vrot.slane %v656_v55, %v2185_v27  ;;  %v669_v2 = vrot.slane %v656_v55, %v2189_v30  ;;  %v1757_v55 = vld [vmem:[%s2383_s11 + $0x18] sm:$0xff]   ;;  %s2417_s22 = sld [smem:[#allocation25_spill]]  ;;  %s1468_s12 = sshll.u32 %s514_s9, 4  ;;  %s1469_s12 = int_to_ptr.vmem [resolvable:$true] %s1468_s12 }
  0x53   : > { %753 = vmatpush1.bf16.msra.mxu1 %v1750_v14  ;;  %v1110_v26 = vsub.s32 6, %v2172_v20  ;;  %vm1322_vm10 = vcmask 1045509   ;;  %vm1324_vm11 = vcmask 1046534   ;;  %vm1326_vm12 = vcmask 1047559   ;;  %s2418_s28 = sld [smem:[#allocation18_spill]]  ;;  %s1841_s27 = scalar_lea.vmem %s1469_s12, 128 }
  0x54   : > { %754 = vmatprep.subr.bf16.mxu1 %v1752_v15  ;;  %s2419_s14 = sld [smem:[#allocation26_spill]]  ;;  %p1842_p1 = scmp.ne.s32.totalorder %s1469_s12, %s1841_s27 }
  0x55   : > { %1629 = vmatpush3.bf16.msra.mxu0 %v1747_v9  ;;  %s2420_s21 = sld [smem:[#allocation27_spill]]  ;;  %s1939_s26 = smov [#allocation13]  }
  0x56   : > { %1630 = vmatprep.subr.bf16.mxu0 %v1931_v0  ;;  %p1843_p8 = pnand %p1842_p1, %p2102_p13 }
  0x57   : > { %755 = vmatpush1.bf16.msra.mxu1 %v1754_v17  ;;  %v1096_v17 = vsub.s32 4, %v2172_v20 }
  0x58   : > { %1638 = vmatprep.subr.bf16.mxu1 %v1931_v0  ;;  %p1844_p10 = pneg %p1843_p8 }
  0x59   : > { %1631 = vmatpush3.bf16.msra.mxu0 %v1751_v13  ;;  %s1602_s17 = sshll.u32 %s2418_s28, 7 }
  0x5a   : > { %1632 = vmatprep.subr.bf16.mxu0 %v1931_v0 }
  0x5b   : > { %s1466_s19 = scalar_lea.hbm %s2420_s21, %s1602_s17 }
  0x5d   : > { %1633 = vmatpush3.bf16.msra.mxu0 %v1755_v16 }
 0x110   : > { %v587_v21 = vpop.f32.mrf.mxu0 }
 0x111   : > { %v2174_v22 = vadd.f32 %v1569_v19, %v587_v21  ;;  %v1103_v21 = vsub.s32 5, %v2172_v20 }
 0x112   : > { %v1624_v23 = vpop.f32.mrf.mxu0 }
 0x113   : > { %594 = vst.msk [vmem:[#allocation3 + $0x3] sm:$0xff] %vm520_vm0, %v2174_v22  ;;  %v1341_v12 = vmul.f32 0.5, %v2174_v22 }
 0x114   : > { %v590_v25 = vpop.f32.mrf.mxu0 }
 0x116   : > { %v1625_v28 = vpop.f32.mrf.mxu0 }
 0x11a   : > { %v597_v34 = vld [vmem:[#allocation3] sm:$0xff] }
 0x11b   : > { %v610_v35 = vld [vmem:[#allocation3 + $0x1] sm:$0xff]  ;;  %v602_v37 = vmul.f32 %v601_v29, %v597_v34 }
 0x11c   : > { %v617_v36 = vld [vmem:[#allocation3 + $0x2] sm:$0xff]  ;;  %v615_v40 = vmul.f32 %v614_v32, %v610_v35 }
 0x11d   : > { %632 = vst.msk [vmem:[#allocation3 - $0x5] sm:$0xe0] %vm631_vm4, %v2174_v22  ;;  %v609_v39 = vadd.f32 %v1573_v31, %v602_v37  ;;  %v624_v42 = vld [vmem:[#allocation3 + $0x3] sm:$0xff]  ;;  %v622_v44 = vmul.f32 %v621_v38, %v617_v36  ;;  %v1117_v31 = vsub.s32 7, %v2172_v20 }
 0x11e   : > { %v629_v46 = vmul.f32 %v628_v41, %v624_v42  ;;  %v1589_v42 = vld [vmem:[%s2380_s8] ss:$0 sm:$0xff] }
 0x11f   : > { %v616_v43 = vadd.f32 %v615_v40, %v609_v39 }
 0x121   : > { %v623_v45 = vadd.f32 %v622_v44, %v616_v43  ;;  %v1590_v43 = vld [vmem:[%s2379_s7 + $0x1] ss:$0 sm:$0xff] }
 0x123   : > { %v630_v47 = vadd.f32 %v629_v46, %v623_v45 }
 0x125   : > { %v633_v48 = vmul.f32 0.5, %v630_v47 }
 0x127   : > { %1761 = vtanh.f32 %v633_v48 }
 0x128   : > { %1763 = vtanh.f32 %v1341_v12 }
 0x134   : > { %v1762_v49 = vpop.eup %1761 }
 0x135   : > { %v635_v50 = vadd.f32 1.0, %v1762_v49  ;;  %v1764_v29 = vpop.eup %1763 }
 0x136   : > { %v1343_v34 = vadd.f32 1.0, %v1764_v29 }
 0x137   : > { %v636_v51 = vmul.f32 0.5, %v635_v50 }
 0x138   : > { %v1344_v37 = vmul.f32 0.5, %v1343_v34 }
 0x139   : > { %v2201_v52 = vmul.f32 %v636_v51, %v630_v47  ;;  %v1592_v47 = vld [vmem:[%s2379_s7 + $0x3] ss:$0 sm:$0xff] }
 0x13a   : > { %v1345_v38 = vmul.f32 %v1344_v37, %v2174_v22  ;;  %v1591_v22 = vld [vmem:[%s2379_s7 + $0x2] ss:$0 sm:$0xff] }
 0x13b   : > { %638 = vst.msk [vmem:[#allocation4] sm:$0xff] %vm520_vm0, %v2201_v52  ;;  %v639_v53 = vpack.c.bf16 %v2201_v52, %v2201_v52 }
 0x13d   : > { %1586 = vmatmul.mubr.msk.bf16.vlgmr.msra.gmra.mxu1 %vm520_vm0, %v639_v53  ;;  %1635 = vmatmul.mubr.msk.bf16.vlgmr.msra.gmra.mxu0 %vm520_vm0, %v639_v53 }
 0x13e   : > { %1646 = vmatprep.mubr.msk.bf16.mxu1 %vm1932_vm1, %v1931_v0  ;;  %1639 = vmatpush3.bf16.msra.mxu1 %v1757_v55 }
 0x13f   : > { %1640 = vmatprep.subr.bf16.mxu1 %v1931_v0 }
 0x1fd   : > { %v774_v57 = vpop.f32.mrf.mxu1  ;;  %v815_v58 = vpop.f32.mrf.mxu0 }
 0x1fe   : > { %v775_v59 = vadd.f32 %v774_v57, %v661_v56  ;;  %v816_v9 = vadd.f32 %v815_v58, %v669_v2  ;;  %v1758_v58 = vld [vmem:[%s2383_s11 + $0x10] sm:$0xff]  }
 0x1ff   : > { %v776_v61 = vpop.f32.mrf.mxu1  ;;  %v1636_v62 = vpop.f32.mrf.mxu0  ;;  %1641 = vmatpush3.bf16.msra.mxu1 %v1758_v58 }
 0x200   : > { %856 = vperm.xlu1 %1735, %v775_v59   ;;  %828 = vperm.xlu0 %1733, %v775_v59   ;;  %v777_v4 = vadd.f32 %v776_v61, %v665_v60  ;;  %v1189_v14 = vrot.slane %v816_v9, %v2179_v24  ;;  %v1196_v15 = vrot.slane %v816_v9, %v2185_v27  ;;  %v1759_v60 = vld [vmem:[%s2383_s11 + $0x8] sm:$0xff]   ;;  %v1760_v61 = vld [vmem:[%s2383_s11] sm:$0xff]  }
 0x201   : > { %v778_v63 = vpop.f32.mrf.mxu1  ;;  %v818_v1 = vpop.f32.mrf.mxu0  ;;  %v1203_v19 = vrot.slane %v816_v9, %v2189_v30  ;;  %v1217_v23 = vrot.slane %v816_v9, %v1096_v17  ;;  %v1210_v28 = vrot.slane %v816_v9, %v2196_v33  ;;  %v1231_v35 = vrot.slane %v816_v9, %v1110_v26  ;;  %1642 = vmatprep.subr.bf16.mxu1 %v1931_v0 }
 0x202   : > { %v1069_v10 = vrot.slane %v777_v4, %v2179_v24  ;;  %v1076_v11 = vrot.slane %v777_v4, %v2185_v27  ;;  %v1083_v13 = vrot.slane %v777_v4, %v2189_v30  ;;  %v1090_v16 = vrot.slane %v777_v4, %v2196_v33  ;;  %v1588_v33 = vld [vmem:[%s2379_s7] ss:$0 sm:$0xff] }
 0x203   : > { %v779_v5 = vpop.f32.mrf.mxu1  ;;  %v1637_v6 = vpop.f32.mrf.mxu0  ;;  %v1097_v18 = vrot.slane %v777_v4, %v1096_v17  ;;  %v1104_v25 = vrot.slane %v777_v4, %v1103_v21  ;;  %v1111_v27 = vrot.slane %v777_v4, %v1110_v26  ;;  %v1118_v32 = vrot.slane %v777_v4, %v1117_v31  ;;  %1643 = vmatpush3.bf16.msra.mxu1 %v1759_v60 }
 0x204   : > { %1736 = vset.pattern.permute.xlu1 %v1935_v7  ;;  %1734 = vset.pattern.permute.xlu0 %v1936_v8  ;;  %v1224_v30 = vrot.slane %v816_v9, %v1103_v21  ;;  %v1238_v36 = vrot.slane %v816_v9, %v1117_v31  ;;  %v1938_v9 = vmov 1966171168  }
 0x205   : > { %867 = vperm.xlu1 %1736, %v775_v59   ;;  %845 = vperm.xlu0 %1734, %v775_v59  }
 0x206   : > { %1644 = vmatprep.subr.bf16.mxu1 %v1931_v0 }
 0x207   : > { %1645 = vmatpush3.bf16.msra.mxu1 %v1760_v61 }
 0x209   : > { %1071 = vbcast.lane.b32.xlu1 %v1069_v10, 256  ;;  %1078 = vbcast.lane.b32.xlu0 %v1076_v11, 256  ;;  %v904_v10 = vunpack.c.l.s4 %v1938_v9 }
 0x20a   : > { %1737 = vset.pattern.permute.xlu0 %v1935_v7 }
 0x20d   : > { %1085 = vbcast.lane.b32.xlu1 %v1083_v13, 256  ;;  %1191 = vbcast.lane.b32.xlu0 %v1189_v14, 256  ;;  %v905_v13 = vunpack.c.0.s8 %v904_v10 }
 0x20f   : > { %v2263_v0 = vsub.s32 %v905_v13, %v2172_v20 }
 0x211   : > { %1198 = vbcast.lane.b32.xlu1 %v1196_v15, 256  ;;  %1092 = vbcast.lane.b32.xlu0 %v1090_v16, 256 }
 0x215   : > { %1099 = vbcast.lane.b32.xlu1 %v1097_v18, 256  ;;  %1205 = vbcast.lane.b32.xlu0 %v1203_v19, 256  ;;  %v2270_v19 = vld [vmem:[%s2415_s25] sm:$0xff] }
 0x219   : > { %1219 = vbcast.lane.b32.xlu1 %v1217_v23, 256  ;;  %1106 = vbcast.lane.b32.xlu0 %v1104_v25, 256 }
 0x21d   : > { %1113 = vbcast.lane.b32.xlu1 %v1111_v27, 256  ;;  %1212 = vbcast.lane.b32.xlu0 %v1210_v28, 256  ;;  %v895_v28 = vld [vmem:[#allocation4] sm:$0xff] }
 0x221   : > { %1120 = vbcast.lane.b32.xlu1 %v1118_v32, 256  ;;  %1226 = vbcast.lane.b32.xlu0 %v1224_v30, 256 }
 0x225   : > { %1233 = vbcast.lane.b32.xlu1 %v1231_v35, 256  ;;  %1240 = vbcast.lane.b32.xlu0 %v1238_v36, 256 }
 0x229   : > { %1347 = vrot.lane.b32.xlu1 %v1345_v38, %s1937_s5 }
 0x27b   : > { %v829_v39 = vpop.permute.xlu0 %828  ;;  %v857_v40 = vpop.permute.xlu1 %856 }
 0x27c   : > { %v835_v41 = vmul.f32 %v1588_v33, %v829_v39  ;;  %v863_v49 = vmul.f32 %v1591_v22, %v857_v40 }
 0x27e   : > { %v842_v45 = vadd.f32 %v1589_v42, %v835_v41 }
 0x280   : > { %v846_v44 = vpop.permute.xlu0 %845  ;;  %v868_v48 = vpop.permute.xlu1 %867 }
 0x281   : > { %v852_v46 = vmul.f32 %v1590_v43, %v846_v44  ;;  %v874_v51 = vmul.f32 %v1592_v47, %v868_v48 }
 0x283   : > { %v853_v50 = vadd.f32 %v852_v46, %v842_v45 }
 0x284   : > { %v1072_v35 = vpop.permute.xlu1 %1071  ;;  %v1079_v36 = vpop.permute.xlu0 %1078 }
 0x285   : > { %v864_v53 = vadd.f32 %v863_v49, %v853_v50 }
 0x287   : > { %v875_v54 = vadd.f32 %v874_v51, %v864_v53 }
 0x288   : > { %v1086_v45 = vpop.permute.xlu1 %1085  ;;  %v1192_v46 = vpop.permute.xlu0 %1191 }
 0x289   : > { %v877_v56 = vand.u32 2147483647, %v875_v54  ;;  %v876_v8 = vmax.f32 %v875_v54, 0.0 }
 0x28b   : > { %v878_v57 = vsub.f32 0.0, %v877_v56  ;;  %v893_v56 = vld [vmem:[#allocation2] sm:$0xff] }
 0x28c   : > { %v1093_v58 = vpop.permute.xlu0 %1092 }
 0x28d   : > { %v879_v59 = vmul.f32 1.442695, %v878_v57  ;;  %v1199_v57 = vpop.permute.xlu1 %1198 }
 0x28f   : > { %1765 = vpow2.f32 %v879_v59 }
 0x291   : > { %v1100_v13 = vpop.permute.xlu1 %1099 }
 0x29c   : > { %v1766_v62 = vpop.eup %1765 }
 0x29d   : > { %v881_v63 = vadd.f32 1.0, %v1766_v62  ;;  %v884_v1 = vmul.f32 -0.5, %v1766_v62  ;;  %v887_v4 = vand.u32 2147483647, %v1766_v62 }
 0x29f   : > { %1767 = vlog2.f32 %v881_v63  ;;  %v885_v2 = vadd.f32 1.0, %v884_v1  ;;  %vm888_vm5 = vcmp.lt.f32.partialorder %v887_v4, 0.0004427343 }
 0x2a1   : > { %v886_v7 = vmul.f32 %v1766_v62, %v885_v2 }
 0x2ac   : > { %v1768_v5 = vpop.eup %1767 }
 0x2ad   : > { %v883_v6 = vmul.f32 0.6931472, %v1768_v5 }
 0x2af   : > { %v889_v11 = vsel %vm888_vm5, %v886_v7, %v883_v6 }
 0x2b0   : > { %v890_v12 = vadd.f32 %v889_v11, %v876_v8 }
 0x2b2   : > { %891 = vst.msk [vmem:[#allocation5] sm:$0xff] %vm520_vm0, %v890_v12 }
 0x2b9   : > { %v894_v14 = vld [vmem:[#allocation5] sm:$0xff] }
 0x2ba   : > { %v909_v15 = vrot.slane %v894_v14, %v2263_v0  ;;  %v902_v16 = vcombine.high %v894_v14, %v894_v14  ;;  %v1015_v30 = vmul.f32 %v895_v28, %v894_v14 }
 0x2bc   : > { %v925_v17 = vrot.slane %v909_v15, %v2263_v0  ;;  %v917_v18 = vcombine.high %v909_v15, %v909_v15  ;;  %v916_v20 = vrot.slane %v902_v16, %v2263_v0  ;;  %v1024_v41 = vrot.slane %v1015_v30, %v2263_v0  ;;  %v1206_v15 = vpop.permute.xlu0 %1205 }
 0x2bd   : > { %v1017_v1 = vcombine.high %v1015_v30, %v1015_v30 }
 0x2be   : > { %v954_v21 = vrot.slane %v925_v17, %v2179_v24  ;;  %v939_v23 = vrot.slane %v917_v18, %v2263_v0  ;;  %v947_v25 = vcombine.high %v925_v17, %v925_v17  ;;  %v932_v37 = vrot.slane %v916_v20, %v2263_v0 }
 0x2bf   : > { %v918_v38 = vcombine.high %v916_v20, %v916_v20  ;;  %v1040_v47 = vrot.slane %v1024_v41, %v2263_v0  ;;  %v1032_v48 = vcombine.high %v1024_v41, %v1024_v41  ;;  %v1031_v14 = vrot.slane %v1017_v1, %v2263_v0 }
 0x2c0   : > { %v991_v26 = vmul.f32 %v954_v21, %v2270_v19  ;;  %v958_v27 = vrot.slane %v939_v23, %v2179_v24  ;;  %v962_v29 = vrot.slane %v947_v25, %v2179_v24  ;;  %v949_v31 = vcombine.high %v939_v23, %v939_v23  ;;  %v1107_v30 = vpop.permute.xlu0 %1106 }
 0x2c1   : > { %v970_v42 = vrot.slane %v932_v37, %v2179_v24  ;;  %v946_v44 = vrot.slane %v918_v38, %v2263_v0  ;;  %v948_v53 = vcombine.high %v932_v37, %v932_v37  ;;  %v1125_v54 = vrot.slane %v1040_v47, %v2179_v24 }
 0x2c2   : > { %v999_v32 = vmul.f32 1.442695, %v991_v26  ;;  %v992_v34 = vmul.f32 %v958_v27, %v2270_v19  ;;  %v993_v39 = vmul.f32 %v962_v29, %v2270_v19  ;;  %v966_v40 = vrot.slane %v949_v31, %v2179_v24 }
 0x2c3   : > { %v995_v49 = vmul.f32 %v970_v42, %v2270_v19  ;;  %v974_v51 = vrot.slane %v946_v44, %v2179_v24  ;;  %v1054_v55 = vrot.slane %v1032_v48, %v2263_v0  ;;  %v978_v61 = vrot.slane %v948_v53, %v2179_v24 }
 0x2c4   : > { %1769 = vpow2.f32 %v999_v32  ;;  %v1001_v33 = vmul.f32 1.442695, %v992_v34  ;;  %v1003_v43 = vmul.f32 1.442695, %v993_v39  ;;  %v994_v22 = vmul.f32 %v966_v40, %v2270_v19  ;;  %v1220_v32 = vpop.permute.xlu1 %1219 }
 0x2c5   : > { %v1007_v59 = vmul.f32 1.442695, %v995_v49  ;;  %v996_v60 = vmul.f32 %v974_v51, %v2270_v19  ;;  %v950_v62 = vcombine.high %v946_v44, %v946_v44  ;;  %v1162_v2 = vmul.f32 %v1125_v54, %v1072_v35  ;;  %v1213_v49 = vpop.permute.xlu0 %1212 }
 0x2c6   : > { %1771 = vpow2.f32 %v1001_v33  ;;  %v1005_v50 = vmul.f32 1.442695, %v994_v22  ;;  %v1129_v5 = vrot.slane %v1054_v55, %v2179_v24  ;;  %v1062_v6 = vcombine.high %v1040_v47, %v1040_v47 }
 0x2c7   : > { %1773 = vpow2.f32 %v1003_v43  ;;  %v1009_v8 = vmul.f32 1.442695, %v996_v60  ;;  %v997_v9 = vmul.f32 %v978_v61, %v2270_v19  ;;  %v982_v10 = vrot.slane %v950_v62, %v2179_v24 }
 0x2c8   : > { %1775 = vpow2.f32 %v1005_v50  ;;  %v1064_v12 = vcombine.high %v1054_v55, %v1054_v55  ;;  %v1163_v16 = vmul.f32 %v1129_v5, %v1079_v36  ;;  %v1133_v18 = vrot.slane %v1062_v6, %v2179_v24  ;;  %v1114_v47 = vpop.permute.xlu1 %1113 }
 0x2c9   : > { %1777 = vpow2.f32 %v1007_v59  ;;  %v1011_v23 = vmul.f32 1.442695, %v997_v9  ;;  %v998_v25 = vmul.f32 %v982_v10, %v2270_v19  ;;  %v1047_v27 = vrot.slane %v1031_v14, %v2263_v0 }
 0x2ca   : > { %1779 = vpow2.f32 %v1009_v8  ;;  %v1137_v26 = vrot.slane %v1064_v12, %v2179_v24  ;;  %v1164_v28 = vmul.f32 %v1133_v18, %v1086_v45  ;;  %v1033_v31 = vcombine.high %v1031_v14, %v1031_v14  ;;  %v1227_v12 = vpop.permute.xlu0 %1226 }
 0x2cb   : > { %1781 = vpow2.f32 %v1011_v23  ;;  %v1013_v36 = vmul.f32 1.442695, %v998_v25  ;;  %v1141_v33 = vrot.slane %v1047_v27, %v2179_v24  ;;  %v1063_v48 = vcombine.high %v1047_v27, %v1047_v27 }
 0x2cc   : > { %v1165_v38 = vmul.f32 %v1137_v26, %v1093_v58  ;;  %v1061_v41 = vrot.slane %v1033_v31, %v2263_v0 }
 0x2cd   : > { %1783 = vpow2.f32 %v1013_v36  ;;  %v1166_v44 = vmul.f32 %v1141_v33, %v1100_v13  ;;  %v1149_v59 = vrot.slane %v1063_v48, %v2179_v24 }
 0x2cf   : > { %v1168_v13 = vmul.f32 %v1149_v59, %v1114_v47 }
 0x2d1   : > { %v1770_v63 = vpop.eup %1769 }
 0x2d2   : > { %v1170_v4 = vmul.f32 %v1770_v63, %v893_v56  ;;  %v1065_v63 = vcombine.high %v1061_v41, %v1061_v41 }
 0x2d3   : > { %v1772_v11 = vpop.eup %1771 }
 0x2d4   : > { %v1171_v7 = vadd.f32 %v1170_v4, %v1162_v2  ;;  %v1774_v20 = vpop.eup %1773  ;;  %v1121_v4 = vpop.permute.xlu1 %1120  ;;  %v1153_v14 = vrot.slane %v1065_v63, %v2179_v24 }
 0x2d5   : > { %v1776_v37 = vpop.eup %1775 }
 0x2d6   : > { %v1172_v17 = vmul.f32 %v1772_v11, %v1171_v7  ;;  %v1242_v39 = vmul.f32 %v1192_v46, %v1171_v7  ;;  %v1778_v42 = vpop.eup %1777  ;;  %v1145_v46 = vrot.slane %v1061_v41, %v2179_v24  ;;  %v1241_v41 = vpop.permute.xlu0 %1240 }
 0x2d8   : > { %v1173_v21 = vadd.f32 %v1172_v17, %v1163_v16  ;;  %v1250_v50 = vsel %vm520_vm0, %v1242_v39, 0.0  ;;  %v1167_v62 = vmul.f32 %v1145_v46, %v1107_v30 }
 0x2d9   : > { %v1251_v58 = vrot.slane %v1250_v50, 4 }
 0x2da   : > { %v1174_v29 = vmul.f32 %v1774_v20, %v1173_v21  ;;  %v1243_v35 = vmul.f32 %v1199_v57, %v1173_v21  ;;  %v1780_v57 = vpop.eup %1779 }
 0x2db   : > { %v1782_v8 = vpop.eup %1781  ;;  %v1252_v9 = vadd.f32 %v1251_v58, %v1250_v50 }
 0x2dc   : > { %v1175_v34 = vadd.f32 %v1174_v29, %v1164_v28  ;;  %v1257_v43 = vsel %vm520_vm0, %v1243_v35, 0.0  ;;  %v1784_v20 = vpop.eup %1783  ;;  %v1234_v29 = vpop.permute.xlu1 %1233 }
 0x2dd   : > { %v1258_v54 = vrot.slane %v1257_v43, 4  ;;  %v1253_v26 = vrot.slane %v1252_v9, 2 }
 0x2de   : > { %v1176_v19 = vmul.f32 %v1776_v37, %v1175_v34  ;;  %v1244_v40 = vmul.f32 %v1206_v15, %v1175_v34 }
 0x2df   : > { %v1259_v2 = vadd.f32 %v1258_v54, %v1257_v43  ;;  %v1254_v33 = vadd.f32 %v1253_v26, %v1252_v9 }
 0x2e0   : > { %v1177_v22 = vadd.f32 %v1176_v19, %v1165_v38  ;;  %v1264_v45 = vsel %vm520_vm0, %v1244_v40, 0.0 }
 0x2e1   : > { %v1265_v55 = vrot.slane %v1264_v45, 4  ;;  %v1260_v17 = vrot.slane %v1259_v2, 2 }
 0x2e2   : > { %v1178_v51 = vmul.f32 %v1778_v42, %v1177_v22  ;;  %v1245_v53 = vmul.f32 %v1213_v49, %v1177_v22  ;;  %v1255_v49 = vrot.slane %v1254_v33, 1 }
 0x2e3   : > { %v1266_v5 = vadd.f32 %v1265_v55, %v1264_v45  ;;  %v1261_v35 = vadd.f32 %v1260_v17, %v1259_v2  ;;  %v1348_v17 = vpop.permute.xlu1 %1347 }
 0x2e4   : > { %v1179_v0 = vadd.f32 %v1178_v51, %v1166_v44  ;;  %v1271_v56 = vsel %vm520_vm0, %v1245_v53, 0.0  ;;  %v1256_v58 = vadd.f32 %v1255_v49, %v1254_v33 }
 0x2e5   : > { %v1272_v60 = vrot.slane %v1271_v56, 4  ;;  %v1267_v21 = vrot.slane %v1266_v5, 2  ;;  %v1262_v22 = vrot.slane %v1261_v35, 1 }
 0x2e6   : > { %v1246_v61 = vmul.f32 %v1220_v32, %v1179_v0  ;;  %v1180_v1 = vmul.f32 %v1780_v57, %v1179_v0  ;;  %v1169_v32 = vmul.f32 %v1153_v14, %v1121_v4 }
 0x2e7   : > { %v1273_v11 = vadd.f32 %v1272_v60, %v1271_v56  ;;  %v1268_v24 = vadd.f32 %v1267_v21, %v1266_v5  ;;  %v1263_v54 = vadd.f32 %v1262_v22, %v1261_v35  ;;  %v1600_v35 = vld [vmem:[%s2419_s14] ss:$0 sm:$0xff] }
 0x2e8   : > { %v1278_v6 = vsel %vm520_vm0, %v1246_v61, 0.0  ;;  %v1181_v7 = vadd.f32 %v1180_v1, %v1167_v62 }
 0x2e9   : > { %v1279_v10 = vrot.slane %v1278_v6, 4  ;;  %v1274_v27 = vrot.slane %v1273_v11, 2  ;;  %v1269_v47 = vrot.slane %v1268_v24, 1  ;;  %v1315_v63 = vsel %vm1314_vm6, %v1263_v54, %v1256_v58 }
 0x2ea   : > { %v1247_v15 = vmul.f32 %v1227_v12, %v1181_v7  ;;  %v1182_v16 = vmul.f32 %v1782_v8, %v1181_v7 }
 0x2eb   : > { %v1280_v18 = vadd.f32 %v1279_v10, %v1278_v6  ;;  %v1275_v39 = vadd.f32 %v1274_v27, %v1273_v11  ;;  %v1270_v57 = vadd.f32 %v1269_v47, %v1268_v24 }
 0x2ec   : > { %v1285_v23 = vsel %vm520_vm0, %v1247_v15, 0.0  ;;  %v1183_v25 = vadd.f32 %v1182_v16, %v1168_v13  ;;  %v1593_v13 = vld [vmem:[%s2416_s29] ss:$0 sm:$0xff]  ;;  %s1454_s29 = scalar_lea.sflag [#allocation10], %s2130_s10 }
 0x2ed   : > { %v1286_v28 = vrot.slane %v1285_v23, 4  ;;  %v1281_v31 = vrot.slane %v1280_v18, 2  ;;  %v1276_v50 = vrot.slane %v1275_v39, 1  ;;  %v1317_v4 = vsel %vm1316_vm7, %v1270_v57, %v1315_v63 }
 0x2ee   : > { %v1248_v30 = vmul.f32 %v1234_v29, %v1183_v25  ;;  %v1184_v34 = vmul.f32 %v1784_v20, %v1183_v25  ;;  %v1339_v14 = vmul.f32 %v1593_v13, %v2201_v52 }
 0x2ef   : > { %v1287_v36 = vadd.f32 %v1286_v28, %v1285_v23  ;;  %v1282_v42 = vadd.f32 %v1281_v31, %v1280_v18  ;;  %v1277_v59 = vadd.f32 %v1276_v50, %v1275_v39  ;;  %v1594_v23 = vld [vmem:[%s2417_s22] ss:$0 sm:$0xff]  ;;  %s1845_s22 = sshll.u32 %s1939_s26, 4  ;;  %s1846_s22 = int_to_ptr.vmem [resolvable:$false] %s1845_s22 }
 0x2f0   : > { %v1292_v37 = vsel %vm520_vm0, %v1248_v30, 0.0  ;;  %v1185_v38 = vadd.f32 %v1184_v34, %v1169_v32  ;;  %s1847_s13 = scalar_lea.vmem %s1846_s22, 256  ;;  %p1848_p0 = scmp.lt.s32.totalorder %s1469_s12, %s1846_s22 }
 0x2f1   : > { %v1288_v19 = vrot.slane %v1287_v36, 2  ;;  %v1293_v40 = vrot.slane %v1292_v37, 4  ;;  %v1283_v53 = vrot.slane %v1282_v42, 1  ;;  %v1319_v6 = vsel %vm1318_vm8, %v1277_v59, %v1317_v4  ;;  %p1849_p2 = scmp.lt.s32.totalorder %s1847_s13, %s1841_s27 }
 0x2f2   : > { %v1249_v43 = vmul.f32 %v1241_v41, %v1185_v38  ;;  %1330 = vst.msk [vmem:[#allocation2] sm:$0xff] %vm520_vm0, %v1185_v38 }
 0x2f3   : > { %v1289_v44 = vadd.f32 %v1288_v19, %v1287_v36  ;;  %v1294_v45 = vadd.f32 %v1293_v40, %v1292_v37  ;;  %v1284_v62 = vadd.f32 %v1283_v53, %v1282_v42  ;;  %p1850_p3 = por %p1849_p2, %p1848_p0 }
 0x2f4   : > { %v1299_v48 = vsel %vm520_vm0, %v1249_v43, 0.0 }
 0x2f5   : > { %v1295_v51 = vrot.slane %v1294_v45, 2  ;;  %v1300_v46 = vrot.slane %v1299_v48, 4  ;;  %v1290_v55 = vrot.slane %v1289_v44, 1  ;;  %v1321_v8 = vsel %vm1320_vm9, %v1284_v62, %v1319_v6  ;;  %p1851_p5 = pnand %p1850_p3, %p1844_p10 }
 0x2f7   : > { %v1296_v0 = vadd.f32 %v1295_v51, %v1294_v45  ;;  %v1301_v56 = vadd.f32 %v1300_v46, %v1299_v48  ;;  %v1291_v1 = vadd.f32 %v1290_v55, %v1289_v44 }
 0x2f9   : > { %v1297_v60 = vrot.slane %v1296_v0, 1  ;;  %v1302_v61 = vrot.slane %v1301_v56, 2  ;;  %v1323_v9 = vsel %vm1322_vm10, %v1291_v1, %v1321_v8 }
 0x2fb   : > { %v1303_v2 = vadd.f32 %v1302_v61, %v1301_v56  ;;  %v1298_v5 = vadd.f32 %v1297_v60, %v1296_v0 }
 0x2fd   : > { %v1304_v7 = vrot.slane %v1303_v2, 1  ;;  %v1325_v11 = vsel %vm1324_vm11, %v1298_v5, %v1323_v9 }
 0x2ff   : > { %v1305_v10 = vadd.f32 %v1304_v7, %v1303_v2 }
 0x301   : > { %v1327_v12 = vsel %vm1326_vm12, %v1305_v10, %v1325_v11 }
 0x302   : > { %1329 = vst.msk [vmem:[#allocation7] sm:$0xff] %vm520_vm0, %v1327_v12 }
 0x309   : > { %v1331_v15 = vld [vmem:[#allocation7] sm:$0xff] }
 0x30a   : > { %v1340_v16 = vadd.f32 %v1339_v14, %v1331_v15 }
 0x30c   : > { %v1350_v18 = vmul.f32 %v1348_v17, %v1340_v16 }
 0x30e   : > { %v1351_v21 = vpack.c.bf16 %v1350_v18, %v1350_v18 }
 0x310   : > { %1647 = vmatmul.mubr.msk.bf16.vlgmr.msra.gmra.mxu1 %vm520_vm0, %v1351_v21 }
 0x3d0   : > { %v1428_v25 = vpop.f32.mrf.mxu1 }
 0x3d1   : > { %v1429_v20 = vadd.f32 %v1594_v23, %v1428_v25 }
 0x3d2   : > { %v1648_v26 = vpop.f32.mrf.mxu1 }
 0x3d3   : > { %v1434_v27 = vmul.f32 %v1429_v20, %v1429_v20 }
 0x3d4   : > { %v1431_v28 = vpop.f32.mrf.mxu1 }
 0x3d5   : > { %v1435_v52 = vsel %vm549_vm2, %v1434_v27, 0.0 }
 0x3d6   : > { %1436 = vadd.xlane.f32.xlu0 %v1435_v52  ;;  %v1649_v29 = vpop.f32.mrf.mxu1 }
 0x45f   : > { %v1437_v31 = vpop.xlane.xlu0 %1436 }
 0x460   : > { %v1439_v32 = vmul.f32 0.03125, %v1437_v31 }
 0x462   : > { %v1440_v30 = vadd.f32 1e-15, %v1439_v32 }
 0x464   : > { %1785 = vrsqrt.f32 %v1440_v30 }
 0x471   : > { %v1786_v34 = vpop.eup %1785 }
 0x472   : > { %v1442_v36 = vmul.f32 %v1786_v34, %v1429_v20 }
 0x474   : > { %v1450_v24 = vmul.f32 %v1600_v35, %v1442_v36 }
 0x476   : > { %v1451_v37 = vadd.f32 %v1450_v24, %v2155_v3 }
 0x478   : > { %1452 = vst.msk [vmem:[%s514_s9] sm:$0xff] %vm549_vm2, %v1451_v37 }
 0x479   : > { %1854 = shalt.err (!%p1851_p5)
}
 0x47a   : > { %s1855_s28 = scalar_lea.hbm %s1466_s19, 128  ;;  %s1859_s5 = scalar_lea.hbm %s2420_s21, 256 }
 0x47b   : > { %p1856_p7 = scmp.ne.s32.totalorder %s1466_s19, %s1855_s28  ;;  %p1860_p9 = scmp.lt.s32.totalorder %s1466_s19, %s2420_s21 }
 0x47c   : > { %p1861_p11 = scmp.lt.s32.totalorder %s1859_s5, %s1855_s28 }
 0x47d   : > { %p1857_p6 = pnand %p1856_p7, %p2102_p13 }
 0x47e   : > { %p1862_p12 = por %p1861_p11, %p1860_p9 }
 0x47f   : > { %p1858_p4 = pneg %p1857_p6 }
 0x481   : > { %p1863_p1 = pnand %p1862_p12, %p1858_p4 }
 0x483   : > { %1866 = shalt.err (!%p1863_p1)
}
 0x484   : > { %1656 = dma.vmem_to_hbm [thread:$0]  (%p2102_p13), %s1469_s12, 128, %s1466_s19, %s1454_s29  }
 0x485 PF: > { %s2421_s9 = sld [smem:[#allocation17_spill]]  ;;  %p2424_p10 = scmp.ge.s32.totalorder %s1925_s18, 2 }
 0x486   : > { %s2422_s23 = sld [smem:[#allocation20_spill]] }
 0x48b   : > { %s1480_s25 = sand.u32 1, %s2421_s9  }
 0x48c   : > { %p2423_p8 = scmp.ne.s32.totalorder %s2422_s23, 0  ;;  %s1481_s27 = scalar_lea.sflag [#allocation10], %s1480_s25 }
 0x48e   : > { %p1667_p0 = pnand %p2424_p10, %p2423_p8 }
 0x490   : > { %p1668_p2 = pneg %p1667_p0 }
 0x492   : > { %1900 = dma.done.wait (%p1668_p2), %s1481_s27, 128  }
 0x493   : > { %1902 = vsyncadd (%p1668_p2), %s1481_s27, 4294967168  ;;  %s31_s18 = sadd.s32 1, %s1925_s18   ;;  %s2425_s16 = sld [smem:[#allocation19_spill]] }
 0x494   : > { %p28_p3 = scmp.ge.s32.totalorder %s31_s18, 4   ;;  %s2426_s17 = sld [smem:[#allocation21_spill]] }
 0x495   : > { %s2427_s29 = smov %s1909_s30  ;;  %s2428_s30 = smov %s1913_s15 }
 0x496   : > { %s2429_s15 = smov %s2111_s24  ;;  %30 = sbr.rel (!%p28_p3) target bundleno = 14 (0xe), region = 130 }
 0x49b   :  { %1486 = vsyncpa [#allocation9], 1 }
 0x49c   :  { %1488 = vsyncpa [#allocation9 + $0x1], 1 }
 0x49d   :  { %1489 = vsyncpa [#allocation12], 1 }
 0x49e   :  { %1490 = vsyncpa [#allocation10], 1 }
 0x49f   :  { %1492 = vsyncpa [#allocation10 + $0x1], 1 }

</bundles_post_ra>
